<compile_context>
chip_gen: v7x
topology: tpu7x:2x2x1
jax: 0.10.0
libtpu: 0.0.40
codegen_flags: <defaults>
</compile_context>

<pallas_src>
import functools

import jax
import jax.numpy as jnp
from jax.experimental import pallas as pl
from jax.experimental.pallas import tpu as pltpu

KPARAM_ORDER = [
    "w1", "w2", "wsca_t", "bsca_row", "w3", "w4", "w5", "bias_pack", "masks",
]


def nafblock_kernel(x_ref,
                    w1, w2, wsca_t, bsca_row, w3, w4, w5, bp_ref, mask_ref,
                    out_ref, *, H, W, C, compute_dtype):
    eps = 1e-6
    HW = H * W
    f32 = jnp.float32
    cdt = compute_dtype

    inp = x_ref[0].astype(f32)                     # (C, HW)

    # Packed per-channel biases (already constant-folded on the host).
    bp = bp_ref[...]                               # (2C, 5) f32
    b1 = bp[:, 0:1]                                # conv1 bias (LN1 folded)
    b2 = bp[:, 1:2]                                # depthwise conv2 bias
    b4 = bp[:, 2:3]                                # conv4 bias (LN2 folded)
    b3 = bp[:C, 3:4]                               # conv3 bias (beta folded)
    b5 = bp[:C, 4:5]                               # conv5 bias (gamma folded)

    # Resident precomputed zero-padding masks for the 8 non-center taps.
    m = mask_ref[...] > 0.5                        # (8, HW) bool

    def layernorm(v):                              # stats in f32; affine folded
        mu = jnp.mean(v, axis=0, keepdims=True)
        d = v - mu
        var = jnp.mean(d * d, axis=0, keepdims=True)
        return d * jax.lax.rsqrt(var + eps)

    def pw(v, w, b):                               # 1x1 conv, f32 accumulation
        return jnp.dot(w.astype(cdt), v, preferred_element_type=f32) + b

    # ---------------- spatial branch ----------------
    xn = layernorm(inp).astype(cdt)                # norm1 (affine in w1/b1)
    xc0 = pw(xn, w1[...], b1).astype(cdt)          # conv1 (fused -> 2C channels)

    # depthwise 3x3, zero padding; center tap needs no roll and no mask.
    wv = w2[...].astype(cdt)                       # (2C, 9) flattened taps
    acc = xc0 * wv[:, 4:5]
    zero = jnp.zeros((), cdt)
    t = 0
    for oh in (-1, 0, 1):
        for ow in (-1, 0, 1):
            if oh == 0 and ow == 0:
                continue
            k = (oh + 1) * 3 + (ow + 1)
            off = oh * W + ow
            shifted = pltpu.roll(xc0, shift=(-off) % HW, axis=1)
            shifted = jnp.where(m[t:t + 1, :], shifted, zero)
            acc = acc + shifted * wv[:, k:k + 1]
            t += 1
    xc = acc + b2.astype(cdt)                      # (2C, HW)

    xg = xc[:C, :] * xc[C:, :]                     # SimpleGate

    # Simplified channel attention on the VPU (no MXU round trip):
    # sca as a (1, C) row, then folded into conv3's weight columns so the
    # (C, HW) "xg * sca" multiply disappears.
    pooled = jnp.mean(xg.astype(f32), axis=1, keepdims=True)          # (C, 1)
    sca_row = (jnp.sum(wsca_t[...] * pooled, axis=0, keepdims=True)
               + bsca_row[...])                                       # (1, C)
    w3s = w3[...] * sca_row                        # conv3 cols scaled by sca

    x3 = pw(xg, w3s, b3)                           # conv3 (beta folded)
    y = inp + x3                                   # residual 1 (f32)

    # ---------------- FFN branch ----------------
    yn = layernorm(y).astype(cdt)                  # norm2 (affine in w4/b4)
    fc = pw(yn, w4[...], b4).astype(cdt)           # conv4 (fused -> 2C)
    fg = fc[:C, :] * fc[C:, :]                     # SimpleGate
    f5 = pw(fg, w5[...], b5)                       # conv5 (gamma folded)

    out_ref[0] = (y + f5).astype(out_ref.dtype)    # residual 2


def nafblock_pallas(x_nchw, kparams, compute_dtype=jnp.float32):
    B, C, H, W = x_nchw.shape
    HW = H * W
    x_flat = x_nchw.reshape(B, C, HW)              # pure reshape, no transpose
    plist = [kparams[k] for k in KPARAM_ORDER]

    in_specs = ([pl.BlockSpec((1, C, HW), lambda b: (b, 0, 0))]
                + [pl.BlockSpec(a.shape, lambda b: (0, 0)) for a in plist])

    out = pl.pallas_call(
        functools.partial(nafblock_kernel, H=H, W=W, C=C,
                          compute_dtype=compute_dtype),
        out_shape=jax.ShapeDtypeStruct((B, C, HW), x_nchw.dtype),
        grid_spec=pltpu.PrefetchScalarGridSpec(
            num_scalar_prefetch=0,
            grid=(B,),
            in_specs=in_specs,
            out_specs=pl.BlockSpec((1, C, HW), lambda b: (b, 0, 0)),
        ),
        compiler_params=pltpu.CompilerParams(
            dimension_semantics=("parallel",),
            # Toy shapes: tiny working set.  For production shapes either
            # raise this (v5e/v6e, 128 MiB physical) or adopt HW row tiling
            # (required on v7x, 64 MiB physical).
            vmem_limit_bytes=32 * 1024 * 1024),
    )(x_flat, *plist)
    return out.reshape(B, C, H, W)


def init_params(key, c):
    """Deterministic synthetic parameters in PyTorch-equivalent layout."""
    dw = 2 * c
    ffn = 2 * c
    ks = jax.random.split(key, 16)

    def rnd(k, shape):
        return 0.2 * jax.random.normal(k, shape, jnp.float32)

    return dict(
        w1=rnd(ks[0], (dw, c)),   b1=rnd(ks[1], (dw,)),      # conv1 1x1
        w2=rnd(ks[2], (dw, 9)),   b2=rnd(ks[3], (dw,)),      # conv2 dw 3x3
        w3=rnd(ks[4], (c, c)),    b3=rnd(ks[5], (c,)),       # conv3 1x1
        wsca=rnd(ks[6], (c, c)),  bsca=rnd(ks[7], (c,)),     # SCA 1x1
        w4=rnd(ks[8], (ffn, c)),  b4=rnd(ks[9], (ffn,)),     # conv4 1x1
        w5=rnd(ks[10], (c, c)),   b5=rnd(ks[11], (c,)),      # conv5 1x1
        n1w=1.0 + 0.1 * jax.random.normal(ks[12], (c,), jnp.float32),
        n1b=rnd(ks[13], (c,)),
        n2w=1.0 + 0.1 * jax.random.normal(ks[14], (c,), jnp.float32),
        n2b=rnd(ks[15], (c,)),
        # PyTorch inits beta/gamma to zeros (block == identity); use nonzero
        # deterministic values so the full kernel path is exercised.
        beta=0.5 * jnp.ones((c,), jnp.float32),
        gamma=0.25 * jnp.ones((c,), jnp.float32),
    )


def prepare_kernel_params(p, C, H, W):
    """Host-side constant folding, packing and mask precompute (all f32)."""
    w1 = p["w1"]; b1 = p["b1"]; w2 = p["w2"]; b2 = p["b2"]
    w3 = p["w3"]; b3 = p["b3"]; wsca = p["wsca"]; bsca = p["bsca"]
    w4 = p["w4"]; b4 = p["b4"]; w5 = p["w5"]; b5 = p["b5"]

    # LayerNorm affine folded into the following 1x1 conv.
    w1f = w1 * p["n1w"][None, :]
    b1f = w1 @ p["n1b"] + b1
    w4f = w4 * p["n2w"][None, :]
    b4f = w4 @ p["n2b"] + b4
    # beta / gamma folded into conv3 / conv5.
    w3f = w3 * p["beta"][:, None]
    b3f = b3 * p["beta"]
    w5f = w5 * p["gamma"][:, None]
    b5f = b5 * p["gamma"]

    dw = 2 * C
    bp = jnp.zeros((dw, 5), jnp.float32)
    bp = bp.at[:, 0].set(b1f).at[:, 1].set(b2).at[:, 2].set(b4f)
    bp = bp.at[:C, 3].set(b3f).at[:C, 4].set(b5f)

    # Zero-padding masks for the 8 non-center 3x3 taps, row-major tap order
    # with (0,0) skipped — must match the kernel's loop order.
    HW = H * W
    lane = jnp.arange(HW, dtype=jnp.int32)
    ii = lane // W
    jj = lane - ii * W
    rows = []
    for oh in (-1, 0, 1):
        for ow in (-1, 0, 1):
            if oh == 0 and ow == 0:
                continue
            ok = (((ii + oh) >= 0) & ((ii + oh) < H)
                  & ((jj + ow) >= 0) & ((jj + ow) < W))
            rows.append(ok.astype(jnp.float32))
    masks = jnp.stack(rows)                                  # (8, HW)

    return dict(
        w1=w1f, w2=w2, w3=w3f, w4=w4f, w5=w5f,
        wsca_t=wsca.T,                                       # (Cin, Cout)
        bsca_row=bsca.reshape(1, C),                         # (1, C)
        bias_pack=bp, masks=masks,
    )


def nafblock_ref(x, p):
    """Pure-JAX NCHW reference (unfused math, different codepath)."""
    eps = 1e-6
    B, C, H, W = x.shape
    hi = jax.lax.Precision.HIGHEST

    def bc(v):
        return v.reshape(1, -1, 1, 1)

    def ln(v, w, b):
        mu = jnp.mean(v, axis=1, keepdims=True)
        var = jnp.mean((v - mu) ** 2, axis=1, keepdims=True)
        return (v - mu) * jax.lax.rsqrt(var + eps) * bc(w) + bc(b)

    def pw(v, w, b):
        return jnp.einsum("oi,bihw->bohw", w, v, precision=hi) + bc(b)

    def dwc(v, w9, b):
        Cd = v.shape[1]
        k = w9.reshape(Cd, 3, 3)
        vp = jnp.pad(v, ((0, 0), (0, 0), (1, 1), (1, 1)))
        acc = jnp.zeros_like(v)
        for i in range(3):
            for j in range(3):
                acc = acc + vp[:, :, i:i + H, j:j + W] * k[:, i, j].reshape(1, Cd, 1, 1)
        return acc + bc(b)

    xn = ln(x, p["n1w"], p["n1b"])
    t = dwc(pw(xn, p["w1"], p["b1"]), p["w2"], p["b2"])
    xg = t[:, :C] * t[:, C:]
    pooled = jnp.mean(xg, axis=(2, 3), keepdims=True)
    sca = jnp.einsum("oi,bixy->boxy", p["wsca"], pooled, precision=hi) + bc(p["bsca"])
    xg = xg * sca
    y = x + pw(xg, p["w3"], p["b3"]) * bc(p["beta"])
    yn = ln(y, p["n2w"], p["n2b"])
    f = pw(yn, p["w4"], p["b4"])
    fg = f[:, :C] * f[:, C:]
    return y + pw(fg, p["w5"], p["b5"]) * bc(p["gamma"])


if __name__ == "__main__":
    key = jax.random.PRNGKey(0)
    kx, kp = jax.random.split(key)
    B, C, H, W = 2, 4, 16, 16            # small NCHW input like PyTorch
    x = jax.random.normal(kx, (B, C, H, W), jnp.float32)
    raw = init_params(kp, C)
    kparams = prepare_kernel_params(raw, C, H, W)

    ref = nafblock_ref(x, raw)

    # Full-precision path (default; also the v5e path — no bf16 VPU there).
    out = jax.block_until_ready(nafblock_pallas(x, kparams, jnp.float32))
    assert out.shape == x.shape and out.dtype == x.dtype
    err = float(jnp.max(jnp.abs(out - ref)))
    assert err < 1e-3, f"f32 max abs err {err}"

    # bf16 compute path (v6e/v7x perf mode: bf16 MXU operands + bf16 VALU
    # work, f32 accumulation / LN stats); looser tolerance.
    out_bf = jax.block_until_ready(nafblock_pallas(x, kparams, jnp.bfloat16))
    err_bf = float(jnp.max(jnp.abs(out_bf - ref)))
    assert err_bf < 1e-1, f"bf16 max abs err {err_bf}"

    print("KERNEL_OK")
</pallas_src>

<mosaic_0001>
module attributes {stable_mosaic.version = 11 : i64} {
  func.func @nafblock_kernel(%arg0: i32, %arg1: memref<1x4x256xf32, #tpu.memory_space<vmem>>, %arg2: memref<8x4xf32, #tpu.memory_space<vmem>>, %arg3: memref<8x9xf32, #tpu.memory_space<vmem>>, %arg4: memref<4x4xf32, #tpu.memory_space<vmem>>, %arg5: memref<1x4xf32, #tpu.memory_space<vmem>>, %arg6: memref<4x4xf32, #tpu.memory_space<vmem>>, %arg7: memref<8x4xf32, #tpu.memory_space<vmem>>, %arg8: memref<4x4xf32, #tpu.memory_space<vmem>>, %arg9: memref<8x5xf32, #tpu.memory_space<vmem>>, %arg10: memref<8x256xf32, #tpu.memory_space<vmem>>, %arg11: memref<1x4x256xf32, #tpu.memory_space<vmem>>) attributes {dimension_semantics = [#tpu.dimension_semantics<parallel>], iteration_bounds = array<i64: 2>, scalar_prefetch = 0 : i64, scratch_operands = 0 : i64, tpu.core_type = #tpu.core_type<tc>, window_params = [{transform_indices = @transform_0, window_bounds = array<i64: 1, 4, 256>}, {pipeline_mode = #tpu.pipeline_mode<synchronous>, transform_indices = @transform_1, window_bounds = array<i64: 8, 4>}, {pipeline_mode = #tpu.pipeline_mode<synchronous>, transform_indices = @transform_2, window_bounds = array<i64: 8, 9>}, {pipeline_mode = #tpu.pipeline_mode<synchronous>, transform_indices = @transform_3, window_bounds = array<i64: 4, 4>}, {pipeline_mode = #tpu.pipeline_mode<synchronous>, transform_indices = @transform_4, window_bounds = array<i64: 1, 4>}, {pipeline_mode = #tpu.pipeline_mode<synchronous>, transform_indices = @transform_5, window_bounds = array<i64: 4, 4>}, {pipeline_mode = #tpu.pipeline_mode<synchronous>, transform_indices = @transform_6, window_bounds = array<i64: 8, 4>}, {pipeline_mode = #tpu.pipeline_mode<synchronous>, transform_indices = @transform_7, window_bounds = array<i64: 4, 4>}, {pipeline_mode = #tpu.pipeline_mode<synchronous>, transform_indices = @transform_8, window_bounds = array<i64: 8, 5>}, {pipeline_mode = #tpu.pipeline_mode<synchronous>, transform_indices = @transform_9, window_bounds = array<i64: 8, 256>}, {transform_indices = @transform_10, window_bounds = array<i64: 1, 4, 256>}]} {
    %c0 = arith.constant 0 : index
    %c0_0 = arith.constant 0 : index
    %c0_1 = arith.constant 0 : index
    %0 = vector.load %arg1[%c0, %c0_0, %c0_1] : memref<1x4x256xf32, #tpu.memory_space<vmem>>, vector<1x4x256xf32>
    %1 = vector.shape_cast %0 : vector<1x4x256xf32> to vector<4x256xf32>
    %c0_2 = arith.constant 0 : index
    %c0_3 = arith.constant 0 : index
    %2 = vector.load %arg9[%c0_2, %c0_3] : memref<8x5xf32, #tpu.memory_space<vmem>>, vector<8x5xf32>
    %3 = vector.extract_strided_slice %2 {offsets = [0, 0], sizes = [8, 1], strides = [1, 1]} : vector<8x5xf32> to vector<8x1xf32>
    %4 = vector.extract_strided_slice %2 {offsets = [0, 1], sizes = [8, 1], strides = [1, 1]} : vector<8x5xf32> to vector<8x1xf32>
    %5 = vector.extract_strided_slice %2 {offsets = [0, 2], sizes = [8, 1], strides = [1, 1]} : vector<8x5xf32> to vector<8x1xf32>
    %6 = vector.extract_strided_slice %2 {offsets = [0, 3], sizes = [4, 1], strides = [1, 1]} : vector<8x5xf32> to vector<4x1xf32>
    %7 = vector.extract_strided_slice %2 {offsets = [0, 4], sizes = [4, 1], strides = [1, 1]} : vector<8x5xf32> to vector<4x1xf32>
    %c0_4 = arith.constant 0 : index
    %c0_5 = arith.constant 0 : index
    %8 = vector.load %arg10[%c0_4, %c0_5] : memref<8x256xf32, #tpu.memory_space<vmem>>, vector<8x256xf32>
    %cst = arith.constant 5.000000e-01 : f32
    %9 = vector.broadcast %cst : f32 to vector<8x256xf32>
    %10 = arith.cmpf ogt, %8, %9 : vector<8x256xf32>
    %cst_6 = arith.constant dense<0.000000e+00> : vector<256xf32>
    %11 = vector.multi_reduction <add>, %1, %cst_6 [0] : vector<4x256xf32> to vector<256xf32>
    %12 = vector.shape_cast %11 : vector<256xf32> to vector<1x256xf32>
    %cst_7 = arith.constant 4.000000e+00 : f32
    %13 = vector.broadcast %cst_7 : f32 to vector<1x256xf32>
    %14 = arith.divf %12, %13 : vector<1x256xf32>
    %15 = vector.broadcast %14 : vector<1x256xf32> to vector<4x256xf32>
    %16 = arith.subf %1, %15 : vector<4x256xf32>
    %17 = arith.mulf %16, %16 : vector<4x256xf32>
    %cst_8 = arith.constant dense<0.000000e+00> : vector<256xf32>
    %18 = vector.multi_reduction <add>, %17, %cst_8 [0] : vector<4x256xf32> to vector<256xf32>
    %19 = vector.shape_cast %18 : vector<256xf32> to vector<1x256xf32>
    %cst_9 = arith.constant 4.000000e+00 : f32
    %20 = vector.broadcast %cst_9 : f32 to vector<1x256xf32>
    %21 = arith.divf %19, %20 : vector<1x256xf32>
    %cst_10 = arith.constant 9.99999997E-7 : f32
    %22 = vector.broadcast %cst_10 : f32 to vector<1x256xf32>
    %23 = arith.addf %21, %22 : vector<1x256xf32>
    %24 = math.rsqrt %23 : vector<1x256xf32>
    %25 = vector.broadcast %24 : vector<1x256xf32> to vector<4x256xf32>
    %26 = arith.mulf %16, %25 : vector<4x256xf32>
    %c0_11 = arith.constant 0 : index
    %c0_12 = arith.constant 0 : index
    %27 = vector.load %arg2[%c0_11, %c0_12] : memref<8x4xf32, #tpu.memory_space<vmem>>, vector<8x4xf32>
    %cst_13 = arith.constant dense<0.000000e+00> : vector<8x256xf32>
    %28 = tpu.matmul %27, %26, %cst_13 {dimension_numbers = #tpu.dot_dimension_numbers<[1], [0], [0], [1], [0, 0, 1, 1], [], []>} : vector<8x4xf32>, vector<4x256xf32>, vector<8x256xf32> -> vector<8x256xf32>
    %29 = vector.broadcast %3 : vector<8x1xf32> to vector<8x256xf32>
    %30 = arith.addf %28, %29 : vector<8x256xf32>
    %c0_14 = arith.constant 0 : index
    %c0_15 = arith.constant 0 : index
    %31 = vector.load %arg3[%c0_14, %c0_15] : memref<8x9xf32, #tpu.memory_space<vmem>>, vector<8x9xf32>
    %32 = vector.extract_strided_slice %31 {offsets = [0, 4], sizes = [8, 1], strides = [1, 1]} : vector<8x9xf32> to vector<8x1xf32>
    %33 = vector.broadcast %32 : vector<8x1xf32> to vector<8x256xf32>
    %34 = arith.mulf %30, %33 : vector<8x256xf32>
    %c17_i32 = arith.constant 17 : i32
    %35 = tpu.dynamic_rotate %30 by %c17_i32 dim 1 : vector<8x256xf32>, i32 -> vector<8x256xf32>
    %36 = vector.extract_strided_slice %10 {offsets = [0, 0], sizes = [1, 256], strides = [1, 1]} : vector<8x256xi1> to vector<1x256xi1>
    %cst_16 = arith.constant 0.000000e+00 : f32
    %37 = vector.shape_cast %36 : vector<1x256xi1> to vector<1x256xi1>
    %38 = vector.broadcast %37 : vector<1x256xi1> to vector<8x256xi1>
    %39 = vector.broadcast %cst_16 : f32 to vector<8x256xf32>
    %40 = arith.select %38, %35, %39 : vector<8x256xi1>, vector<8x256xf32>
    %41 = vector.extract_strided_slice %31 {offsets = [0, 0], sizes = [8, 1], strides = [1, 1]} : vector<8x9xf32> to vector<8x1xf32>
    %42 = vector.broadcast %41 : vector<8x1xf32> to vector<8x256xf32>
    %43 = arith.mulf %40, %42 : vector<8x256xf32>
    %44 = arith.addf %34, %43 : vector<8x256xf32>
    %c16_i32 = arith.constant 16 : i32
    %45 = tpu.dynamic_rotate %30 by %c16_i32 dim 1 : vector<8x256xf32>, i32 -> vector<8x256xf32>
    %46 = vector.extract_strided_slice %10 {offsets = [1, 0], sizes = [1, 256], strides = [1, 1]} : vector<8x256xi1> to vector<1x256xi1>
    %cst_17 = arith.constant 0.000000e+00 : f32
    %47 = vector.shape_cast %46 : vector<1x256xi1> to vector<1x256xi1>
    %48 = vector.broadcast %47 : vector<1x256xi1> to vector<8x256xi1>
    %49 = vector.broadcast %cst_17 : f32 to vector<8x256xf32>
    %50 = arith.select %48, %45, %49 : vector<8x256xi1>, vector<8x256xf32>
    %51 = vector.extract_strided_slice %31 {offsets = [0, 1], sizes = [8, 1], strides = [1, 1]} : vector<8x9xf32> to vector<8x1xf32>
    %52 = vector.broadcast %51 : vector<8x1xf32> to vector<8x256xf32>
    %53 = arith.mulf %50, %52 : vector<8x256xf32>
    %54 = arith.addf %44, %53 : vector<8x256xf32>
    %c15_i32 = arith.constant 15 : i32
    %55 = tpu.dynamic_rotate %30 by %c15_i32 dim 1 : vector<8x256xf32>, i32 -> vector<8x256xf32>
    %56 = vector.extract_strided_slice %10 {offsets = [2, 0], sizes = [1, 256], strides = [1, 1]} : vector<8x256xi1> to vector<1x256xi1>
    %cst_18 = arith.constant 0.000000e+00 : f32
    %57 = vector.shape_cast %56 : vector<1x256xi1> to vector<1x256xi1>
    %58 = vector.broadcast %57 : vector<1x256xi1> to vector<8x256xi1>
    %59 = vector.broadcast %cst_18 : f32 to vector<8x256xf32>
    %60 = arith.select %58, %55, %59 : vector<8x256xi1>, vector<8x256xf32>
    %61 = vector.extract_strided_slice %31 {offsets = [0, 2], sizes = [8, 1], strides = [1, 1]} : vector<8x9xf32> to vector<8x1xf32>
    %62 = vector.broadcast %61 : vector<8x1xf32> to vector<8x256xf32>
    %63 = arith.mulf %60, %62 : vector<8x256xf32>
    %64 = arith.addf %54, %63 : vector<8x256xf32>
    %c1_i32 = arith.constant 1 : i32
    %65 = tpu.dynamic_rotate %30 by %c1_i32 dim 1 : vector<8x256xf32>, i32 -> vector<8x256xf32>
    %66 = vector.extract_strided_slice %10 {offsets = [3, 0], sizes = [1, 256], strides = [1, 1]} : vector<8x256xi1> to vector<1x256xi1>
    %cst_19 = arith.constant 0.000000e+00 : f32
    %67 = vector.shape_cast %66 : vector<1x256xi1> to vector<1x256xi1>
    %68 = vector.broadcast %67 : vector<1x256xi1> to vector<8x256xi1>
    %69 = vector.broadcast %cst_19 : f32 to vector<8x256xf32>
    %70 = arith.select %68, %65, %69 : vector<8x256xi1>, vector<8x256xf32>
    %71 = vector.extract_strided_slice %31 {offsets = [0, 3], sizes = [8, 1], strides = [1, 1]} : vector<8x9xf32> to vector<8x1xf32>
    %72 = vector.broadcast %71 : vector<8x1xf32> to vector<8x256xf32>
    %73 = arith.mulf %70, %72 : vector<8x256xf32>
    %74 = arith.addf %64, %73 : vector<8x256xf32>
    %c255_i32 = arith.constant 255 : i32
    %75 = tpu.dynamic_rotate %30 by %c255_i32 dim 1 : vector<8x256xf32>, i32 -> vector<8x256xf32>
    %76 = vector.extract_strided_slice %10 {offsets = [4, 0], sizes = [1, 256], strides = [1, 1]} : vector<8x256xi1> to vector<1x256xi1>
    %cst_20 = arith.constant 0.000000e+00 : f32
    %77 = vector.shape_cast %76 : vector<1x256xi1> to vector<1x256xi1>
    %78 = vector.broadcast %77 : vector<1x256xi1> to vector<8x256xi1>
    %79 = vector.broadcast %cst_20 : f32 to vector<8x256xf32>
    %80 = arith.select %78, %75, %79 : vector<8x256xi1>, vector<8x256xf32>
    %81 = vector.extract_strided_slice %31 {offsets = [0, 5], sizes = [8, 1], strides = [1, 1]} : vector<8x9xf32> to vector<8x1xf32>
    %82 = vector.broadcast %81 : vector<8x1xf32> to vector<8x256xf32>
    %83 = arith.mulf %80, %82 : vector<8x256xf32>
    %84 = arith.addf %74, %83 : vector<8x256xf32>
    %c241_i32 = arith.constant 241 : i32
    %85 = tpu.dynamic_rotate %30 by %c241_i32 dim 1 : vector<8x256xf32>, i32 -> vector<8x256xf32>
    %86 = vector.extract_strided_slice %10 {offsets = [5, 0], sizes = [1, 256], strides = [1, 1]} : vector<8x256xi1> to vector<1x256xi1>
    %cst_21 = arith.constant 0.000000e+00 : f32
    %87 = vector.shape_cast %86 : vector<1x256xi1> to vector<1x256xi1>
    %88 = vector.broadcast %87 : vector<1x256xi1> to vector<8x256xi1>
    %89 = vector.broadcast %cst_21 : f32 to vector<8x256xf32>
    %90 = arith.select %88, %85, %89 : vector<8x256xi1>, vector<8x256xf32>
    %91 = vector.extract_strided_slice %31 {offsets = [0, 6], sizes = [8, 1], strides = [1, 1]} : vector<8x9xf32> to vector<8x1xf32>
    %92 = vector.broadcast %91 : vector<8x1xf32> to vector<8x256xf32>
    %93 = arith.mulf %90, %92 : vector<8x256xf32>
    %94 = arith.addf %84, %93 : vector<8x256xf32>
    %c240_i32 = arith.constant 240 : i32
    %95 = tpu.dynamic_rotate %30 by %c240_i32 dim 1 : vector<8x256xf32>, i32 -> vector<8x256xf32>
    %96 = vector.extract_strided_slice %10 {offsets = [6, 0], sizes = [1, 256], strides = [1, 1]} : vector<8x256xi1> to vector<1x256xi1>
    %cst_22 = arith.constant 0.000000e+00 : f32
    %97 = vector.shape_cast %96 : vector<1x256xi1> to vector<1x256xi1>
    %98 = vector.broadcast %97 : vector<1x256xi1> to vector<8x256xi1>
    %99 = vector.broadcast %cst_22 : f32 to vector<8x256xf32>
    %100 = arith.select %98, %95, %99 : vector<8x256xi1>, vector<8x256xf32>
    %101 = vector.extract_strided_slice %31 {offsets = [0, 7], sizes = [8, 1], strides = [1, 1]} : vector<8x9xf32> to vector<8x1xf32>
    %102 = vector.broadcast %101 : vector<8x1xf32> to vector<8x256xf32>
    %103 = arith.mulf %100, %102 : vector<8x256xf32>
    %104 = arith.addf %94, %103 : vector<8x256xf32>
    %c239_i32 = arith.constant 239 : i32
    %105 = tpu.dynamic_rotate %30 by %c239_i32 dim 1 : vector<8x256xf32>, i32 -> vector<8x256xf32>
    %106 = vector.extract_strided_slice %10 {offsets = [7, 0], sizes = [1, 256], strides = [1, 1]} : vector<8x256xi1> to vector<1x256xi1>
    %cst_23 = arith.constant 0.000000e+00 : f32
    %107 = vector.shape_cast %106 : vector<1x256xi1> to vector<1x256xi1>
    %108 = vector.broadcast %107 : vector<1x256xi1> to vector<8x256xi1>
    %109 = vector.broadcast %cst_23 : f32 to vector<8x256xf32>
    %110 = arith.select %108, %105, %109 : vector<8x256xi1>, vector<8x256xf32>
    %111 = vector.extract_strided_slice %31 {offsets = [0, 8], sizes = [8, 1], strides = [1, 1]} : vector<8x9xf32> to vector<8x1xf32>
    %112 = vector.broadcast %111 : vector<8x1xf32> to vector<8x256xf32>
    %113 = arith.mulf %110, %112 : vector<8x256xf32>
    %114 = arith.addf %104, %113 : vector<8x256xf32>
    %115 = vector.broadcast %4 : vector<8x1xf32> to vector<8x256xf32>
    %116 = arith.addf %114, %115 : vector<8x256xf32>
    %117 = vector.extract_strided_slice %116 {offsets = [0, 0], sizes = [4, 256], strides = [1, 1]} : vector<8x256xf32> to vector<4x256xf32>
    %118 = vector.extract_strided_slice %116 {offsets = [4, 0], sizes = [4, 256], strides = [1, 1]} : vector<8x256xf32> to vector<4x256xf32>
    %119 = arith.mulf %117, %118 : vector<4x256xf32>
    %cst_24 = arith.constant dense<0.000000e+00> : vector<4xf32>
    %120 = vector.multi_reduction <add>, %119, %cst_24 [1] : vector<4x256xf32> to vector<4xf32>
    %121 = vector.shape_cast %120 : vector<4xf32> to vector<4x1xf32>
    %cst_25 = arith.constant 2.560000e+02 : f32
    %122 = vector.broadcast %cst_25 : f32 to vector<4x1xf32>
    %123 = arith.divf %121, %122 : vector<4x1xf32>
    %c0_26 = arith.constant 0 : index
    %c0_27 = arith.constant 0 : index
    %124 = vector.load %arg4[%c0_26, %c0_27] : memref<4x4xf32, #tpu.memory_space<vmem>>, vector<4x4xf32>
    %125 = vector.broadcast %123 : vector<4x1xf32> to vector<4x4xf32>
    %126 = arith.mulf %124, %125 : vector<4x4xf32>
    %cst_28 = arith.constant dense<0.000000e+00> : vector<4xf32>
    %127 = vector.multi_reduction <add>, %126, %cst_28 [0] : vector<4x4xf32> to vector<4xf32>
    %128 = vector.shape_cast %127 : vector<4xf32> to vector<1x4xf32>
    %c0_29 = arith.constant 0 : index
    %c0_30 = arith.constant 0 : index
    %129 = vector.load %arg5[%c0_29, %c0_30] : memref<1x4xf32, #tpu.memory_space<vmem>>, vector<1x4xf32>
    %130 = arith.addf %128, %129 : vector<1x4xf32>
    %c0_31 = arith.constant 0 : index
    %c0_32 = arith.constant 0 : index
    %131 = vector.load %arg6[%c0_31, %c0_32] : memref<4x4xf32, #tpu.memory_space<vmem>>, vector<4x4xf32>
    %132 = vector.broadcast %130 : vector<1x4xf32> to vector<4x4xf32>
    %133 = arith.mulf %131, %132 : vector<4x4xf32>
    %cst_33 = arith.constant dense<0.000000e+00> : vector<4x256xf32>
    %134 = tpu.matmul %133, %119, %cst_33 {dimension_numbers = #tpu.dot_dimension_numbers<[1], [0], [0], [1], [0, 0, 1, 1], [], []>} : vector<4x4xf32>, vector<4x256xf32>, vector<4x256xf32> -> vector<4x256xf32>
    %135 = vector.broadcast %6 : vector<4x1xf32> to vector<4x256xf32>
    %136 = arith.addf %134, %135 : vector<4x256xf32>
    %137 = arith.addf %1, %136 : vector<4x256xf32>
    %cst_34 = arith.constant dense<0.000000e+00> : vector<256xf32>
    %138 = vector.multi_reduction <add>, %137, %cst_34 [0] : vector<4x256xf32> to vector<256xf32>
    %139 = vector.shape_cast %138 : vector<256xf32> to vector<1x256xf32>
    %cst_35 = arith.constant 4.000000e+00 : f32
    %140 = vector.broadcast %cst_35 : f32 to vector<1x256xf32>
    %141 = arith.divf %139, %140 : vector<1x256xf32>
    %142 = vector.broadcast %141 : vector<1x256xf32> to vector<4x256xf32>
    %143 = arith.subf %137, %142 : vector<4x256xf32>
    %144 = arith.mulf %143, %143 : vector<4x256xf32>
    %cst_36 = arith.constant dense<0.000000e+00> : vector<256xf32>
    %145 = vector.multi_reduction <add>, %144, %cst_36 [0] : vector<4x256xf32> to vector<256xf32>
    %146 = vector.shape_cast %145 : vector<256xf32> to vector<1x256xf32>
    %cst_37 = arith.constant 4.000000e+00 : f32
    %147 = vector.broadcast %cst_37 : f32 to vector<1x256xf32>
    %148 = arith.divf %146, %147 : vector<1x256xf32>
    %cst_38 = arith.constant 9.99999997E-7 : f32
    %149 = vector.broadcast %cst_38 : f32 to vector<1x256xf32>
    %150 = arith.addf %148, %149 : vector<1x256xf32>
    %151 = math.rsqrt %150 : vector<1x256xf32>
    %152 = vector.broadcast %151 : vector<1x256xf32> to vector<4x256xf32>
    %153 = arith.mulf %143, %152 : vector<4x256xf32>
    %c0_39 = arith.constant 0 : index
    %c0_40 = arith.constant 0 : index
    %154 = vector.load %arg7[%c0_39, %c0_40] : memref<8x4xf32, #tpu.memory_space<vmem>>, vector<8x4xf32>
    %cst_41 = arith.constant dense<0.000000e+00> : vector<8x256xf32>
    %155 = tpu.matmul %154, %153, %cst_41 {dimension_numbers = #tpu.dot_dimension_numbers<[1], [0], [0], [1], [0, 0, 1, 1], [], []>} : vector<8x4xf32>, vector<4x256xf32>, vector<8x256xf32> -> vector<8x256xf32>
    %156 = vector.broadcast %5 : vector<8x1xf32> to vector<8x256xf32>
    %157 = arith.addf %155, %156 : vector<8x256xf32>
    %158 = vector.extract_strided_slice %157 {offsets = [0, 0], sizes = [4, 256], strides = [1, 1]} : vector<8x256xf32> to vector<4x256xf32>
    %159 = vector.extract_strided_slice %157 {offsets = [4, 0], sizes = [4, 256], strides = [1, 1]} : vector<8x256xf32> to vector<4x256xf32>
    %160 = arith.mulf %158, %159 : vector<4x256xf32>
    %c0_42 = arith.constant 0 : index
    %c0_43 = arith.constant 0 : index
    %161 = vector.load %arg8[%c0_42, %c0_43] : memref<4x4xf32, #tpu.memory_space<vmem>>, vector<4x4xf32>
    %cst_44 = arith.constant dense<0.000000e+00> : vector<4x256xf32>
    %162 = tpu.matmul %161, %160, %cst_44 {dimension_numbers = #tpu.dot_dimension_numbers<[1], [0], [0], [1], [0, 0, 1, 1], [], []>} : vector<4x4xf32>, vector<4x256xf32>, vector<4x256xf32> -> vector<4x256xf32>
    %163 = vector.broadcast %7 : vector<4x1xf32> to vector<4x256xf32>
    %164 = arith.addf %162, %163 : vector<4x256xf32>
    %165 = arith.addf %137, %164 : vector<4x256xf32>
    %c0_45 = arith.constant 0 : index
    %c0_46 = arith.constant 0 : index
    %c0_47 = arith.constant 0 : index
    %166 = vector.load %arg11[%c0_45, %c0_46, %c0_47] : memref<1x4x256xf32, #tpu.memory_space<vmem>>, vector<1x4x256xf32>
    %167 = vector.shape_cast %166 : vector<1x4x256xf32> to vector<4x256xf32>
    %168 = vector.shape_cast %165 : vector<4x256xf32> to vector<1x4x256xf32>
    tpu.vector_store %arg11[%c0_45, %c0_46, %c0_47], %168 {strides = array<i32>} : memref<1x4x256xf32, #tpu.memory_space<vmem>>, vector<1x4x256xf32>,
    return
  }
  func.func @transform_0(%arg0: i32) -> (i32, i32, i32) {
    %c0_i32 = arith.constant 0 : i32
    %c0_i32_0 = arith.constant 0 : i32
    %c0_i32_1 = arith.constant 0 : i32
    return %arg0, %c0_i32, %c0_i32_0 : i32, i32, i32
  }
  func.func @transform_1(%arg0: i32) -> (i32, i32) {
    %c0_i32 = arith.constant 0 : i32
    %c0_i32_0 = arith.constant 0 : i32
    %c0_i32_1 = arith.constant 0 : i32
    return %c0_i32, %c0_i32_0 : i32, i32
  }
  func.func @transform_2(%arg0: i32) -> (i32, i32) {
    %c0_i32 = arith.constant 0 : i32
    %c0_i32_0 = arith.constant 0 : i32
    %c0_i32_1 = arith.constant 0 : i32
    return %c0_i32, %c0_i32_0 : i32, i32
  }
  func.func @transform_3(%arg0: i32) -> (i32, i32) {
    %c0_i32 = arith.constant 0 : i32
    %c0_i32_0 = arith.constant 0 : i32
    %c0_i32_1 = arith.constant 0 : i32
    return %c0_i32, %c0_i32_0 : i32, i32
  }
  func.func @transform_4(%arg0: i32) -> (i32, i32) {
    %c0_i32 = arith.constant 0 : i32
    %c0_i32_0 = arith.constant 0 : i32
    %c0_i32_1 = arith.constant 0 : i32
    return %c0_i32, %c0_i32_0 : i32, i32
  }
  func.func @transform_5(%arg0: i32) -> (i32, i32) {
    %c0_i32 = arith.constant 0 : i32
    %c0_i32_0 = arith.constant 0 : i32
    %c0_i32_1 = arith.constant 0 : i32
    return %c0_i32, %c0_i32_0 : i32, i32
  }
  func.func @transform_6(%arg0: i32) -> (i32, i32) {
    %c0_i32 = arith.constant 0 : i32
    %c0_i32_0 = arith.constant 0 : i32
    %c0_i32_1 = arith.constant 0 : i32
    return %c0_i32, %c0_i32_0 : i32, i32
  }
  func.func @transform_7(%arg0: i32) -> (i32, i32) {
    %c0_i32 = arith.constant 0 : i32
    %c0_i32_0 = arith.constant 0 : i32
    %c0_i32_1 = arith.constant 0 : i32
    return %c0_i32, %c0_i32_0 : i32, i32
  }
  func.func @transform_8(%arg0: i32) -> (i32, i32) {
    %c0_i32 = arith.constant 0 : i32
    %c0_i32_0 = arith.constant 0 : i32
    %c0_i32_1 = arith.constant 0 : i32
    return %c0_i32, %c0_i32_0 : i32, i32
  }
  func.func @transform_9(%arg0: i32) -> (i32, i32) {
    %c0_i32 = arith.constant 0 : i32
    %c0_i32_0 = arith.constant 0 : i32
    %c0_i32_1 = arith.constant 0 : i32
    return %c0_i32, %c0_i32_0 : i32, i32
  }
  func.func @transform_10(%arg0: i32) -> (i32, i32, i32) {
    %c0_i32 = arith.constant 0 : i32
    %c0_i32_0 = arith.constant 0 : i32
    %c0_i32_1 = arith.constant 0 : i32
    return %arg0, %c0_i32, %c0_i32_0 : i32, i32, i32
  }
}

</mosaic_0001>

<bundles_post_ra>
// kernel: tpu_custom_call.1
= control target key start
LH: loop header
LB: loop body
LE: loop exit
PB: predicated region body
PF: predicated region fallthrough
CT: control target
= control target key end

     0   :  { %15 = vsyncpa [#allocation3], 0  ;;  %s4074_s0 = inlined_call_operand.vmem [shape: f32[2,4,256], index: 0, kind: input, shape index: {}]   ;;  %s4075_s1 = inlined_call_operand.vmem [shape: f32[8,4], index: 1, kind: input, shape index: {}]   ;;  %s4076_s2 = inlined_call_operand.hbm [shape: f32[8,9], index: 2, kind: input, shape index: {}]   ;;  %s4077_s3 = inlined_call_operand.hbm [shape: f32[4,4], index: 3, kind: input, shape index: {}]   ;;  %s4078_s4 = inlined_call_operand.vmem [shape: f32[1,4], index: 4, kind: input, shape index: {}]   ;;  %s4079_s5 = inlined_call_operand.hbm [shape: f32[4,4], index: 5, kind: input, shape index: {}]   ;;  %s4080_s6 = inlined_call_operand.vmem [shape: f32[8,4], index: 6, kind: input, shape index: {}]   ;;  %s4081_s7 = inlined_call_operand.vmem [shape: f32[4,4], index: 7, kind: input, shape index: {}]   ;;  %s4082_s8 = inlined_call_operand.vmem [shape: f32[8,5], index: 8, kind: input, shape index: {}]   ;;  %s4083_s9 = inlined_call_operand.vmem [shape: f32[8,256], index: 9, kind: input, shape index: {}]   ;;  %s4084_s10 = inlined_call_operand.hbm [shape: f32[2,4,256], index: 10, kind: output, shape index: {}]  }
   0x1   :  { %16 = vsyncpa [#allocation6], 0 }
   0x2   :  { %17 = vsyncpa [#allocation4], 0 }
   0x3   :  { %19 = vsyncpa [#allocation4 + $0x1], 0  ;;  %s2507_s13 = smov 0   ;;  %s2509_s14 = smov 0  }
   0x4   :  { %s2511_s15 = smov 0   ;;  %s2513_s16 = smov 0  }
   0x5 LB: > { %4132 = sst [smem:[#allocation12_spill]] %s2424_s15  ;;  %s2528_s17 = sadd.s32 4294967295, %s2428_s16   ;;  %s2428_s16 = sphi %s2513_s16, %s4402_s16   ;;  %s2424_s15 = sphi %s2511_s15, %s4407_s15   ;;  %s2420_s14 = sphi %s2509_s14, %s4406_s14   ;;  %s2416_s13 = sphi %s2507_s13, %s4405_s13  }
   0x6   : > { %s2131_s18 = sadd.s32 4294967294, %s2428_s16   ;;  %s2532_s19 = sadd.s32 1, %s2428_s16  }
   0x7   : > { %4133 = sst [smem:[#allocation13_spill]] %s2532_s19  ;;  %s247_s20 = sadd.s32 1, %s2424_s15 }
   0x8   : > { %s244_s21 = ssub.s32 %s2428_s16, %s2532_s19  ;;  %p257_p0 = scmp.ne.s32.totalorder %s2424_s15, %s2420_s14 }
   0x9   : > { %p245_p1 = scmp.eq.s32.totalorder %s244_s21, 0  ;;  %p258_p2 = scmp.eq.s32.totalorder %s2528_s17, 1 }
   0xa   : > { %p263_p3 = scmp.ne.s32.totalorder %s2420_s14, %s2416_s13  ;;  %p264_p4 = scmp.eq.s32.totalorder %s2131_s18, 1 }
   0xb   : > { %s2543_s22 = scalar_select %p245_p1, %s2424_s15, %s247_s20  }
   0xc   : > { %p2545_p5 = por %p258_p2, %p257_p0  ;;  %p2549_p6 = por %p264_p4, %p263_p3 }
   0xd   : > { %4134 = sst [smem:[#allocation14_spill]] %s2543_s22  ;;  %p2132_p7 = scmp.ge.s32.totalorder %s2428_s16, 1 }
   0xe   : > { %s4135_s23 = scalar_select %p2545_p5, 1, 0 }
   0xf   : > { %s4136_s24 = scalar_select %p2549_p6, 1, 0 }
  0x10   : > { %p271_p8 = scmp.lt.s32.totalorder %s2428_s16, 3  ;;  %p4086_p9 = scmp.eq.s32.totalorder %s2528_s17, 0 }
  0x11   : > { %4137 = sst [smem:[#allocation15_spill]] %s4136_s24  ;;  %s2430_s26 = smov [#allocation5]  }
  0x12   : > { %p2556_p10 = pnand %p2132_p7, %p271_p8  ;;  %s298_s27 = sshll.u32 %s2430_s26, 4  ;;  %s299_s27 = int_to_ptr.vmem [resolvable:$true] %s298_s27 }
  0x13   : > { %s2431_s28 = smov [#allocation2]   ;;  %s2432_s11 = smov [#allocation7]  }
  0x14   : > { %s4138_s25 = scalar_select %p2556_p10, 1, 0 }
  0x15   : > { %p2177_p11 = pneg %p2556_p10  ;;  %s287_s29 = sshll.u32 %s2431_s28, 4  ;;  %s2568_s29 = int_to_ptr.vmem [resolvable:$true] %s287_s29 }
  0x16   : > { %s312_s12 = sshll.u32 %s2432_s11, 4  ;;  %s2274_s21 = scalar_lea.hbm %s4077_s3, 64  ;;  %s2570_s12 = int_to_ptr.vmem [resolvable:$true] %s312_s12 }
  0x17   : > { %p2564_p12 = pnand %p4086_p9, %p2177_p11  ;;  %p2275_p13 = scmp.ne.s32.totalorder %s4077_s3, %s2274_s21 }
  0x18   : > { %p2281_p3 = scmp.lt.u32.totalorder %s2274_s21, %s4077_s3 }
  0x19   : > { %p2580_p0 = pneg %p2564_p12 }
  0x1b   : > { %p2277_p1 = pnand %p2580_p0, %p2275_p13 }
  0x1d   : > { %p2278_p2 = pneg %p2277_p1 }
  0x1f   : > { %p2283_p4 = pnand %p2281_p3, %p2278_p2 }
  0x21   : > { %2286 = shalt.err (!%p2283_p4)
}
  0x22   : > { %s2287_s18 = scalar_lea.vmem %s299_s27, 64  ;;  %p2295_p9 = scmp.lt.s32.totalorder %s299_s27, %s299_s27 }
  0x23   : > { %p2288_p7 = scmp.ne.s32.totalorder %s299_s27, %s2287_s18  ;;  %p2296_p6 = scmp.lt.s32.totalorder %s2287_s18, %s2287_s18 }
  0x25   : > { %p2290_p8 = pnand %p2288_p7, %p2580_p0  ;;  %p2297_p5 = por %p2296_p6, %p2295_p9 }
  0x27   : > { %p2291_p11 = pneg %p2290_p8 }
  0x29   : > { %p2298_p10 = pnand %p2297_p5, %p2291_p11 }
  0x2b   : > { %2301 = shalt.err (!%p2298_p10)
}
  0x2c   : > { %2183 = dma.hbm_to_vmem [thread:$0]  (!%p2564_p12), %s4077_s3, 64, %s299_s27, [#allocation6]  }
  0x2d   : > { %s2302_s26 = scalar_lea.hbm %s4076_s2, 128 }
  0x2e   : > { %p2303_p13 = scmp.ne.s32.totalorder %s4076_s2, %s2302_s26  ;;  %p2309_p5 = scmp.lt.u32.totalorder %s2302_s26, %s4076_s2 }
  0x30   : > { %p2305_p1 = pnand %p2303_p13, %p2580_p0 }
  0x32   : > { %p2306_p6 = pneg %p2305_p1 }
  0x34   : > { %p2311_p9 = pnand %p2309_p5, %p2306_p6 }
  0x36   : > { %2314 = shalt.err (!%p2311_p9)
}
  0x37   : > { %s2315_s27 = scalar_lea.vmem %s2568_s29, 128  ;;  %p2323_p4 = scmp.lt.s32.totalorder %s2568_s29, %s2568_s29 }
  0x38   : > { %p2316_p10 = scmp.ne.s32.totalorder %s2568_s29, %s2315_s27  ;;  %p2324_p7 = scmp.lt.s32.totalorder %s2315_s27, %s2315_s27 }
  0x3a   : > { %p2318_p2 = pnand %p2316_p10, %p2580_p0  ;;  %p2325_p8 = por %p2324_p7, %p2323_p4 }
  0x3c   : > { %p2319_p3 = pneg %p2318_p2 }
  0x3e   : > { %p2326_p11 = pnand %p2325_p8, %p2319_p3 }
  0x40   : > { %2329 = shalt.err (!%p2326_p11)
}
  0x41   : > { %2180 = dma.hbm_to_vmem [thread:$0]  (!%p2564_p12), %s4076_s2, 128, %s2568_s29, [#allocation3]  }
  0x42   : > { %s2330_s15 = scalar_lea.hbm %s4079_s5, 64 }
  0x43   : > { %p2331_p13 = scmp.ne.s32.totalorder %s4079_s5, %s2330_s15  ;;  %p2337_p5 = scmp.lt.u32.totalorder %s2330_s15, %s4079_s5 }
  0x45   : > { %p2333_p1 = pnand %p2331_p13, %p2580_p0 }
  0x47   : > { %p2334_p6 = pneg %p2333_p1 }
  0x49   : > { %p2339_p9 = pnand %p2337_p5, %p2334_p6 }
  0x4b   : > { %2342 = shalt.err (!%p2339_p9)
}
  0x4c   : > { %s2343_s29 = scalar_lea.vmem %s2570_s12, 64  ;;  %p2351_p4 = scmp.lt.s32.totalorder %s2570_s12, %s2570_s12 }
  0x4d   : > { %p2344_p10 = scmp.ne.s32.totalorder %s2570_s12, %s2343_s29  ;;  %p2352_p7 = scmp.lt.s32.totalorder %s2343_s29, %s2343_s29 }
  0x4f   : > { %p2346_p2 = pnand %p2344_p10, %p2580_p0  ;;  %p2353_p8 = por %p2352_p7, %p2351_p4 }
  0x51   : > { %p2347_p3 = pneg %p2346_p2 }
  0x53   : > { %p2354_p11 = pnand %p2353_p8, %p2347_p3 }
  0x55   : > { %2357 = shalt.err (!%p2354_p11)
}
  0x56   : > { %2186 = dma.hbm_to_vmem [thread:$0]  (!%p2564_p12), %s4079_s5, 64, %s2570_s12, [#allocation6]  }
  0x57   : > { %p4141_p13 = scmp.ne.s32.totalorder %s4138_s25, 0 }
  0x59   : > { %345 = sbr.rel (%p4141_p13) target bundleno = 1603 (0x643), region = 60 }
  0x60   : > { %p4142_p1 = scmp.eq.s32.totalorder %s2528_s17, 0 }
  0x62   : > { %2403 = dma.done.wait (%p4142_p1), [#allocation3], 128   ;;  %p4143_p0 = pmov %p4142_p1 }
  0x64   : > { %2405 = vsyncadd (%p4143_p0), [#allocation3], 4294967168  ;;  %p4144_p6 = pmov %p4143_p0 }
  0x65   : > { %p4145_p5 = pmov %p4143_p0 }
  0x66   : > { %2407 = dma.done.wait (%p4144_p6), [#allocation6], 128  }
  0x67   : > { %2409 = vsyncadd (%p4145_p5), [#allocation6], 4294967168  ;;  %p391_p9 = scmp.lt.s32.totalorder %s2528_s17, 1  ;;  %v4092_v0 = vmov 0.0   ;;  %v2434_v1 = vmov 1   ;;  %v2435_v2 = vmov 0  }
  0x68   : > { %537 = vmatprep.mubr.f32.mxu0 %v4092_v0  ;;  %1777 = vmatprep.mubr.f32.mxu1 %v4092_v0  ;;  %vm405_vm0 = vcmask 1043456   ;;  %v544_v6 = vld [vmem:[#allocation2] sm:$0xff]  ;;  %v2436_v14 = vmov 2   ;;  %v2437_v19 = vmov 3   ;;  %v2438_v20 = vmov 4   ;;  %s2443_s26 = smov 16  }
  0x69   : > { %s392_s25 = scalar_select %p391_p9, %s2528_s17, 1  ;;  %2252 = vset.pattern.permute.xlu1 %v2434_v1  ;;  %2251 = vset.pattern.permute.xlu0 %v2435_v2  ;;  %v2666_v7 = vld [vmem:[%s4082_s8] sm:$0xff]  ;;  %v2439_v25 = vmov 5   ;;  %v2440_v27 = vmov 7   ;;  %v2441_v30 = vmov 6   ;;  %v2442_v35 = vmov 8  }
  0x6a   : > { %758 = vperm.xlu1 %2252, %v544_v6   ;;  %460 = vperm.xlu0 %2251, %v2666_v7   ;;  %v457_v57 = vld [vmem:[%s4075_s1] sm:$0xff]  ;;  %vm465_vm1 = vcmask 31744   ;;  %s2444_s11 = smov 17   ;;  %s2445_s18 = smov 15   ;;  %vm664_vm6 = vcmask 1041409   ;;  %vm667_vm8 = vcmask 1042434  }
  0x6b   : > { %s2161_s30 = sshll.u32 %s392_s25, 3  ;;  %s2446_s29 = smov 127   ;;  %vm670_vm9 = vcmask 1043459   ;;  %vm673_vm15 = vcmask 1044484  }
  0x6c   : > { %s2659_s24 = scalar_lea.vmem %s4074_s0, %s2161_s30  ;;  %s2447_s27 = smov 1  }
  0x6d   : > { %v396_v3 = vld [vmem:[%s2659_s24] sm:$0xff]  ;;  %s2448_s19 = smov 113   ;;  %s2449_s25 = smov 112  }
  0x6e   : > { %v403_v4 = vcombine.high %v396_v3, %v396_v3  ;;  %v406_v5 = vsel %vm405_vm0, %v396_v3, 0.0  ;;  %2253 = vset.pattern.permute.xlu1 %v2436_v14  ;;  %614 = vperm.xlu0 %2251, %v544_v6   ;;  %s2450_s30 = smov 111   ;;  %p4399_p10 = scmp.ne.s32.totalorder %s4135_s23, 0 }
  0x6f   : > { %v407_v8 = vrot.slane %v406_v5, 4  ;;  %895 = vperm.xlu1 %2253, %v544_v6  }
  0x70   : > { %v413_v9 = vsel %vm405_vm0, %v403_v4, 0.0 }
  0x71   : > { %v408_v10 = vadd.f32 %v407_v8, %v406_v5  ;;  %v414_v11 = vrot.slane %v413_v9, 4 }
  0x72   : > { %2254 = vset.pattern.permute.xlu0 %v2437_v19 }
  0x73   : > { %v409_v12 = vrot.slane %v408_v10, 2  ;;  %v415_v13 = vadd.f32 %v414_v11, %v413_v9  ;;  %2257 = vset.pattern.permute.xlu1 %v2438_v20  ;;  %1032 = vperm.xlu0 %2254, %v544_v6  }
  0x74   : > { %547 = vperm.xlu1 %2257, %v544_v6  }
  0x75   : > { %v410_v15 = vadd.f32 %v409_v12, %v408_v10  ;;  %v416_v16 = vrot.slane %v415_v13, 2 }
  0x77   : > { %v411_v17 = vrot.slane %v410_v15, 1  ;;  %v417_v18 = vadd.f32 %v416_v16, %v415_v13  ;;  %2255 = vset.pattern.permute.xlu0 %v2439_v25 }
  0x78   : > { %1169 = vperm.xlu0 %2255, %v544_v6   ;;  %2258 = vset.pattern.permute.xlu1 %v2440_v27 }
  0x79   : > { %v412_v21 = vadd.f32 %v411_v17, %v410_v15  ;;  %v418_v22 = vrot.slane %v417_v18, 1  ;;  %1443 = vperm.xlu1 %2258, %v544_v6  }
  0x7b   : > { %v419_v23 = vadd.f32 %v418_v22, %v417_v18  ;;  %v421_v24 = vmul.f32 0.25, %v412_v21 }
  0x7c   : > { %2256 = vset.pattern.permute.xlu0 %v2441_v30 }
  0x7d   : > { %v422_v26 = vmul.f32 0.25, %v419_v23  ;;  %1306 = vperm.xlu0 %2256, %v544_v6  }
  0x7f   : > { %v425_v28 = vcombine.low %v421_v24, %v422_v26 }
  0x81   : > { %v427_v29 = vsub.f32 %v396_v3, %v425_v28  ;;  %2259 = vset.pattern.permute.xlu0 %v2442_v35 }
  0x82   : > { %1580 = vperm.xlu0 %2259, %v544_v6  }
  0x83   : > { %v428_v31 = vmul.f32 %v427_v29, %v427_v29 }
  0x85   : > { %v430_v32 = vcombine.high %v428_v31, %v428_v31  ;;  %v432_v33 = vsel %vm405_vm0, %v428_v31, 0.0 }
  0x86   : > { %v433_v34 = vrot.slane %v432_v33, 4  ;;  %2260 = vset.pattern.permute.xlu0 %v2434_v1 }
  0x87   : > { %v439_v36 = vsel %vm405_vm0, %v430_v32, 0.0  ;;  %v2745_v32 = vld [vmem:[%s4083_s9] sm:$0xff] }
  0x88   : > { %v434_v37 = vadd.f32 %v433_v34, %v432_v33  ;;  %v440_v38 = vrot.slane %v439_v36, 4  ;;  %vm400_vm3 = vcmp.gt.f32.partialorder %v2745_v32, 0.5 }
  0x8a   : > { %v435_v39 = vrot.slane %v434_v37, 2  ;;  %v441_v40 = vadd.f32 %v440_v38, %v439_v36 }
  0x8c   : > { %v436_v41 = vadd.f32 %v435_v39, %v434_v37  ;;  %v442_v42 = vrot.slane %v441_v40, 2 }
  0x8e   : > { %v437_v43 = vrot.slane %v436_v41, 1  ;;  %v443_v44 = vadd.f32 %v442_v42, %v441_v40 }
  0x90   : > { %v438_v45 = vadd.f32 %v437_v43, %v436_v41  ;;  %v444_v46 = vrot.slane %v443_v44, 1  ;;  %v2765_v43 = vld [vmem:[%s4083_s9 + $0x8] sm:$0xff] }
  0x91   : > { %vm401_vm4 = vcmp.gt.f32.partialorder %v2765_v43, 0.5 }
  0x92   : > { %v445_v47 = vadd.f32 %v444_v46, %v443_v44  ;;  %v446_v48 = vmul.f32 0.25, %v438_v45 }
  0x94   : > { %v447_v49 = vmul.f32 0.25, %v445_v47  ;;  %v448_v50 = vadd.f32 1e-06, %v446_v48 }
  0x96   : > { %v449_v51 = vadd.f32 1e-06, %v447_v49  ;;  %2265 = vrsqrt.f32 %v448_v50 }
  0x98   : > { %2267 = vrsqrt.f32 %v449_v51 }
  0xa0   : > { %v2266_v52 = vpop.eup %2265 }
  0xa2   : > { %v2268_v53 = vpop.eup %2267 }
  0xa3   : > { %v454_v54 = vcombine.low %v2266_v52, %v2268_v53 }
  0xa5   : > { %v456_v55 = vmul.f32 %v454_v54, %v427_v29 }
  0xa7   : > { %v464_v56 = vcombine.high %v456_v55, %v456_v55 }
  0xa9   : > { %2144 = vmatprep.subr.msk.mxu0 %vm405_vm0, %v464_v56 }
  0xaa   : > { %2145 = vmatpush1.msk.msra.mxu0 %vm405_vm0, %v456_v55 }
  0xab   : > { %2146 = vmatmul.mubr.msk.f32.vlgmr.msra.gmra.mrb[0].mxu0 %vm465_vm1, %v457_v57 }
  0xac   : > { %1920 = vmatprep.mubr.f32.mxu0 %v4092_v0 }
  0xe9   : > { %v461_v58 = vpop.permute.xlu0 %460  ;;  %v2703_v2 = vpop.permute.xlu1 %758 }
  0xed   : > { %v2699_v63 = vpop.permute.xlu0 %614 }
  0xee   : > { %v2707_v4 = vpop.permute.xlu1 %895  ;;  %v616_v10 = vrot.slane %v2699_v63, 1  ;;  %v617_v12 = vrot.slane %v2699_v63, 2  ;;  %v618_v13 = vrot.slane %v2699_v63, 3  ;;  %v620_v17 = vrot.slane %v2699_v63, 5 }
  0xef   : > { %v621_v18 = vrot.slane %v2699_v63, 6 }
  0xf2   : > { %v2701_v1 = vpop.permute.xlu0 %1032 }
  0xf3   : > { %4146 = vst [vmem:[#allocation16_spill] sm:$0xff] %v2701_v1  ;;  %v548_v6 = vpop.permute.xlu1 %547  ;;  %v1034_v25 = vrot.slane %v2701_v1, 5  ;;  %v1035_v26 = vrot.slane %v2701_v1, 6  ;;  %v1036_v29 = vrot.slane %v2701_v1, 7  ;;  %v1037_v30 = vrot.slane %v2701_v1, 1 }
  0xf4   : > { %v1038_v31 = vrot.slane %v2701_v1, 2 }
  0xf7   : > { %v2705_v3 = vpop.permute.xlu0 %1169 }
  0xf8   : > { %4147 = vst [vmem:[#allocation17_spill] sm:$0xff] %v2705_v3  ;;  %v2711_v8 = vpop.permute.xlu1 %1443 }
  0xfc   : > { %v2709_v5 = vpop.permute.xlu0 %1306 }
  0xfd   : > { %4148 = vst [vmem:[#allocation18_spill] sm:$0xff] %v2709_v5 }
 0x101   : > { %v2713_v9 = vpop.permute.xlu0 %1580 }
 0x17e   : > { %v539_v59 = vpop.f32.mrb[0].mxu0 }
 0x17f   : > { %v2682_v60 = vadd.f32 %v539_v59, %v461_v58  ;;  %v541_v61 = vpop.f32.mrb[1].mxu0 }
 0x180   : > { %v542_v62 = vadd.f32 %v541_v61, %v461_v58 }
 0x181   : > { %702 = vrot.lane.b32.xlu1 %v2682_v60, %s2443_s26  ;;  %552 = vrot.lane.b32.xlu0 %v2682_v60, %s2444_s11  ;;  %v2748_v33 = vmul.f32 %v548_v6, %v2682_v60 }
 0x182   : > { %v2750_v34 = vmul.f32 %v548_v6, %v542_v62 }
 0x183   : > { %4149 = vst [vmem:[#allocation19_spill] sm:$0xff] %v2748_v33 }
 0x185   : > { %839 = vrot.lane.b32.xlu1 %v2682_v60, %s2445_s18  ;;  %1113 = vrot.lane.b32.xlu0 %v2682_v60, %s2446_s29 }
 0x189   : > { %976 = vrot.lane.b32.xlu1 %v2682_v60, %s2447_s27  ;;  %978 = vrot.lane.b32.xlu0 %v542_v62, %s2447_s27 }
 0x18d   : > { %1250 = vrot.lane.b32.xlu1 %v2682_v60, %s2448_s19  ;;  %1387 = vrot.lane.b32.xlu0 %v2682_v60, %s2449_s25 }
 0x191   : > { %554 = vrot.lane.b32.xlu1 %v542_v62, %s2444_s11  ;;  %1524 = vrot.lane.b32.xlu0 %v2682_v60, %s2450_s30 }
 0x195   : > { %704 = vrot.lane.b32.xlu1 %v542_v62, %s2443_s26  ;;  %1662 = vperm.xlu0 %2260, %v2666_v7  }
 0x199   : > { %841 = vrot.lane.b32.xlu1 %v542_v62, %s2445_s18  ;;  %2261 = vset.pattern.permute.xlu0 %v2437_v19  ;;  %v622_v19 = vrot.slane %v2699_v63, 7 }
 0x19a   : > { %1701 = vperm.xlu0 %2261, %v2666_v7  }
 0x19d   : > { %1115 = vrot.lane.b32.xlu1 %v542_v62, %s2446_s29  ;;  %s388_s29 = sand.u32 1, %s2420_s14  }
 0x19e   : > { %2262 = vset.pattern.permute.xlu0 %v2436_v14  ;;  %v619_v14 = vrot.slane %v2699_v63, 4  ;;  %s2141_s27 = sshll.u32 %s388_s29, 3  ;;  %s2027_s20 = scalar_lea.sflag [#allocation4], %s388_s29 }
 0x19f   : > { %1844 = vperm.xlu0 %2262, %v2666_v7  }
 0x1a1   : > { %1252 = vrot.lane.b32.xlu1 %v542_v62, %s2448_s19  ;;  %s2162_s19 = sshll.u32 %s2528_s17, 7  ;;  %s2451_s17 = smov [#allocation8]  }
 0x1a2   : > { %s4032_s22 = scalar_lea.hbm %s4084_s10, %s2162_s19  ;;  %s2362_s21 = sshll.u32 %s2451_s17, 4  ;;  %s2363_s21 = int_to_ptr.vmem [resolvable:$false] %s2362_s21 }
 0x1a3   : > { %2263 = vset.pattern.permute.xlu0 %v2438_v20 }
 0x1a4   : > { %1937 = vperm.xlu0 %2263, %v2666_v7   ;;  %v4093_v7 = vlaneseq }
 0x1a5   : > { %1389 = vrot.lane.b32.xlu1 %v542_v62, %s2449_s25  ;;  %s390_s25 = scalar_lea.vmem [#allocation8], %s2141_s27 }
 0x1a6   : > { %v2717_v11 = vand.u32 127, %v4093_v7 }
 0x1a8   : > { %vm980_vm2 = vcmp.lt.s32.totalorder %v2717_v11, 1  ;;  %vm558_vm5 = vcmp.lt.s32.totalorder %v2717_v11, 17  ;;  %vm706_vm7 = vcmp.lt.s32.totalorder %v2717_v11, 16  ;;  %vm843_vm10 = vcmp.lt.s32.totalorder %v2717_v11, 15 }
 0x1a9   : > { %1526 = vrot.lane.b32.xlu1 %v542_v62, %s2450_s30  ;;  %vm1117_vm11 = vcmp.lt.s32.totalorder %v2717_v11, 127  ;;  %vm1254_vm12 = vcmp.lt.s32.totalorder %v2717_v11, 113  ;;  %vm1391_vm13 = vcmp.lt.s32.totalorder %v2717_v11, 112  ;;  %vm1528_vm14 = vcmp.lt.s32.totalorder %v2717_v11, 111  ;;  %s2041_s30 = sshll.u32 %s390_s25, 4  ;;  %s4034_s30 = int_to_ptr.vmem [resolvable:$true] %s2041_s30 }
 0x1aa   : > { %s2358_s15 = scalar_lea.vmem %s4034_s30, 128  ;;  %p2365_p4 = scmp.lt.s32.totalorder %s4034_s30, %s2363_s21 }
 0x1ab   : > { %p2359_p12 = scmp.ne.s32.totalorder %s4034_s30, %s2358_s15 }
 0x1ad   : > { %p2360_p2 = pnand %p2359_p12, %p4399_p10 }
 0x1af   : > { %p2361_p3 = pneg %p2360_p2 }
 0x1f3   : > { %v2722_v15 = vpop.permute.xlu1 %702  ;;  %v2724_v16 = vpop.permute.xlu0 %552 }
 0x1f7   : > { %v2752_v35 = vpop.permute.xlu1 %839  ;;  %v2754_v36 = vpop.permute.xlu0 %1113 }
 0x1fb   : > { %v977_v52 = vpop.permute.xlu1 %976  ;;  %v979_v53 = vpop.permute.xlu0 %978 }
 0x1fc   : > { %v2783_v58 = vsel %vm980_vm2, %v979_v53, %v977_v52  ;;  %v2794_v57 = vsel %vm980_vm2, %v977_v52, %v979_v53  ;;  %vm676_vm2 = vcmask 1045509  }
 0x1fd   : > { %4150 = vst [vmem:[#allocation20_spill] sm:$0xff] %v2783_v58  ;;  %4151 = vst [vmem:[#allocation21_spill] sm:$0xff] %v2794_v57  ;;  %v985_v62 = vrot.slane %v2783_v58, 5  ;;  %v987_v6 = vrot.slane %v2783_v58, 6  ;;  %v986_v61 = vrot.slane %v2794_v57, 5  ;;  %v988_v50 = vrot.slane %v2794_v57, 6 }
 0x1fe   : > { %v989_v49 = vrot.slane %v2783_v58, 7  ;;  %v991_v7 = vrot.slane %v2783_v58, 1  ;;  %v993_v56 = vrot.slane %v2783_v58, 2  ;;  %v990_v59 = vrot.slane %v2794_v57, 7 }
 0x1ff   : > { %v2804_v51 = vpop.permute.xlu1 %1250  ;;  %v992_v60 = vrot.slane %v2794_v57, 1  ;;  %v1015_v55 = vsel %vm400_vm3, %v985_v62, 0.0  ;;  %v1017_v54 = vsel %vm400_vm3, %v987_v6, 0.0  ;;  %v994_v0 = vrot.slane %v2794_v57, 2 }
 0x200   : > { %v995_v48 = vrot.slane %v2783_v58, 3  ;;  %v996_v47 = vrot.slane %v2794_v57, 3  ;;  %v1016_v46 = vsel %vm401_vm4, %v986_v61, 0.0  ;;  %v1018_v45 = vsel %vm401_vm4, %v988_v50, 0.0 }
 0x201   : > { %v1019_v62 = vsel %vm400_vm3, %v989_v49, 0.0  ;;  %v1023_v6 = vsel %vm400_vm3, %v991_v7, 0.0  ;;  %v1025_v44 = vsel %vm400_vm3, %v993_v56, 0.0  ;;  %v1049_v52 = vmul.f32 %v1034_v25, %v1015_v55 }
 0x202   : > { %v1051_v53 = vmul.f32 %v1035_v26, %v1017_v54  ;;  %v1020_v61 = vsel %vm401_vm4, %v990_v59, 0.0  ;;  %v1021_v49 = vsel %vm400_vm3, %v2783_v58, 0.0  ;;  %v1022_v7 = vsel %vm401_vm4, %v2794_v57, 0.0 }
 0x203   : > { %v555_v42 = vpop.permute.xlu1 %554  ;;  %v1024_v50 = vsel %vm401_vm4, %v992_v60, 0.0  ;;  %v1026_v55 = vsel %vm401_vm4, %v994_v0, 0.0  ;;  %v2857_v54 = vsel %vm400_vm3, %v995_v48, 0.0  ;;  %v2861_v56 = vmul.f32 %v1034_v25, %v1016_v46 }
 0x204   : > { %4152 = vst [vmem:[#allocation22_spill] sm:$0xff] %v2857_v54  ;;  %v2865_v59 = vmul.f32 %v1036_v29, %v1019_v62  ;;  %v2869_v41 = vmul.f32 %v1035_v26, %v1018_v45  ;;  %v2873_v60 = vmul.f32 %v1037_v30, %v1023_v6  ;;  %v2877_v0 = vmul.f32 %v1038_v31, %v1025_v44 }
 0x205   : > { %v559_v25 = vsel %vm558_vm5, %v2724_v16, %v555_v42  ;;  %v2884_v46 = vmul.f32 %v1036_v29, %v1020_v61  ;;  %v1081_v48 = vrot.slane %v1049_v52, 3  ;;  %v1082_v62 = vrot.slane %v1051_v53, 2 }
 0x206   : > { %4153 = vst [vmem:[#allocation23_spill] sm:$0xff] %v2865_v59  ;;  %4154 = vst [vmem:[#allocation24_spill] sm:$0xff] %v2873_v60  ;;  %v560_v26 = vsel %vm558_vm5, %v555_v42, %v2724_v16  ;;  %v2891_v45 = vsel %vm401_vm4, %v996_v47, 0.0  ;;  %v2895_v44 = vmul.f32 %v1037_v30, %v1024_v50  ;;  %v2899_v6 = vmul.f32 %v1038_v31, %v1026_v55 }
 0x207   : > { %4155 = vst [vmem:[#allocation25_spill] sm:$0xff] %v2877_v0  ;;  %4156 = vst [vmem:[#allocation26_spill] sm:$0xff] %v2884_v46  ;;  %v567_v29 = vrot.slane %v560_v26, 1  ;;  %v2902_v52 = vmul.f32 %v2701_v1, %v1021_v49  ;;  %v2905_v53 = vmul.f32 %v2701_v1, %v1022_v7  ;;  %v568_v42 = vrot.slane %v559_v25, 1 }
 0x208   : > { %4157 = vst [vmem:[#allocation27_spill] sm:$0xff] %v2891_v45  ;;  %4158 = vst [vmem:[#allocation28_spill] sm:$0xff] %v2895_v44  ;;  %v1095_v30 = vrot.slane %v2861_v56, 3  ;;  %v569_v50 = vrot.slane %v560_v26, 2  ;;  %v2912_v31 = vsel %vm664_vm6, %v1082_v62, %v1081_v48  ;;  %v1096_v55 = vrot.slane %v2869_v41, 2 }
 0x209   : > { %4159 = vst [vmem:[#allocation29_spill] sm:$0xff] %v2899_v6  ;;  %4160 = vst [vmem:[#allocation30_spill] sm:$0xff] %v2902_v52  ;;  %v570_v40 = vrot.slane %v559_v25, 2  ;;  %v571_v39 = vrot.slane %v560_v26, 3  ;;  %v599_v47 = vsel %vm400_vm3, %v567_v29, 0.0  ;;  %v572_v61 = vrot.slane %v559_v25, 3 }
 0x20a   : > { %4161 = vst [vmem:[#allocation31_spill] sm:$0xff] %v2905_v53  ;;  %4162 = vst [vmem:[#allocation32_spill] sm:$0xff] %v2912_v31  ;;  %v573_v38 = vrot.slane %v560_v26, 4  ;;  %v574_v37 = vrot.slane %v559_v25, 4  ;;  %v600_v48 = vsel %vm401_vm4, %v568_v42, 0.0  ;;  %v575_v41 = vrot.slane %v560_v26, 5 }
 0x20b   : > { %v576_v62 = vrot.slane %v559_v25, 5  ;;  %v577_v49 = vrot.slane %v560_v26, 6  ;;  %v601_v7 = vsel %vm400_vm3, %v569_v50, 0.0  ;;  %v578_v28 = vrot.slane %v559_v25, 6 }
 0x20c   : > { %v579_v16 = vrot.slane %v560_v26, 7  ;;  %v602_v27 = vsel %vm401_vm4, %v570_v40, 0.0  ;;  %v633_v29 = vmul.f32 %v616_v10, %v599_v47  ;;  %v580_v24 = vrot.slane %v559_v25, 7 }
 0x20d   : > { %v597_v42 = vsel %vm400_vm3, %v560_v26, 0.0  ;;  %v598_v23 = vsel %vm401_vm4, %v559_v25, 0.0  ;;  %v634_v22 = vmul.f32 %v616_v10, %v600_v48  ;;  %v603_v50 = vsel %vm400_vm3, %v571_v39, 0.0 }
 0x20e   : > { %v604_v40 = vsel %vm401_vm4, %v572_v61, 0.0  ;;  %v605_v47 = vsel %vm400_vm3, %v573_v38, 0.0  ;;  %v635_v21 = vmul.f32 %v617_v12, %v601_v7  ;;  %v606_v26 = vsel %vm401_vm4, %v574_v37, 0.0 }
 0x20f   : > { %v607_v25 = vsel %vm400_vm3, %v575_v41, 0.0  ;;  %v608_v10 = vsel %vm401_vm4, %v576_v62, 0.0  ;;  %v636_v39 = vmul.f32 %v617_v12, %v602_v27  ;;  %v609_v61 = vsel %vm400_vm3, %v577_v49, 0.0  ;;  %v705_v49 = vpop.permute.xlu1 %704 }
 0x210   : > { %v610_v38 = vsel %vm401_vm4, %v578_v28, 0.0  ;;  %v611_v7 = vsel %vm400_vm3, %v579_v16, 0.0  ;;  %v663_v37 = vrot.slane %v633_v29, 7  ;;  %v612_v48 = vsel %vm401_vm4, %v580_v24, 0.0 }
 0x211   : > { %v631_v41 = vmul.f32 %v2699_v63, %v597_v42  ;;  %v632_v62 = vmul.f32 %v2699_v63, %v598_v23  ;;  %v684_v20 = vrot.slane %v634_v22, 7  ;;  %v637_v12 = vmul.f32 %v618_v13, %v603_v50 }
 0x212   : > { %v2965_v27 = vmul.f32 %v619_v14, %v605_v47  ;;  %v2969_v28 = vmul.f32 %v620_v17, %v607_v25  ;;  %v666_v16 = vrot.slane %v635_v21, 6  ;;  %v2973_v24 = vmul.f32 %v621_v18, %v609_v61 }
 0x213   : > { %v2977_v22 = vmul.f32 %v622_v19, %v611_v7  ;;  %v665_v23 = vsel %vm664_vm6, %v663_v37, %v631_v41  ;;  %v686_v29 = vrot.slane %v636_v39, 6  ;;  %v638_v42 = vmul.f32 %v618_v13, %v604_v40 }
 0x214   : > { %v2984_v50 = vmul.f32 %v619_v14, %v606_v26  ;;  %v2988_v21 = vmul.f32 %v620_v17, %v608_v10  ;;  %v685_v47 = vsel %vm664_vm6, %v684_v20, %v632_v62  ;;  %v2993_v25 = vmul.f32 %v621_v18, %v610_v38 }
 0x215   : > { %4163 = vst [vmem:[#allocation33_spill] sm:$0xff] %v2977_v22  ;;  %v2997_v39 = vmul.f32 %v622_v19, %v612_v48  ;;  %v707_v13 = vsel %vm706_vm7, %v2722_v15, %v705_v49  ;;  %v708_v14 = vsel %vm706_vm7, %v705_v49, %v2722_v15  ;;  %v3008_v17 = vsel %vm664_vm6, %v1096_v55, %v1095_v30 }
 0x216   : > { %4164 = vst [vmem:[#allocation34_spill] sm:$0xff] %v3008_v17  ;;  %v668_v18 = vsel %vm667_vm8, %v666_v16, %v665_v23  ;;  %v669_v20 = vrot.slane %v637_v12, 5  ;;  %v687_v10 = vsel %vm667_vm8, %v686_v29, %v685_v47  ;;  %v688_v61 = vrot.slane %v638_v42, 5 }
 0x217   : > { %v711_v56 = vrot.slane %v708_v14, 7  ;;  %v712_v38 = vrot.slane %v707_v13, 7  ;;  %v713_v41 = vrot.slane %v708_v14, 1  ;;  %v714_v62 = vrot.slane %v707_v13, 1 }
 0x218   : > { %v3018_v30 = vsel %vm670_vm9, %v669_v20, %v668_v18  ;;  %v3024_v48 = vsel %vm670_vm9, %v688_v61, %v687_v10  ;;  %v715_v12 = vrot.slane %v708_v14, 2  ;;  %v716_v16 = vrot.slane %v707_v13, 2 }
 0x219   : > { %v717_v49 = vrot.slane %v708_v14, 3  ;;  %v718_v23 = vrot.slane %v707_v13, 3  ;;  %v719_v29 = vrot.slane %v708_v14, 4  ;;  %v720_v42 = vrot.slane %v707_v13, 4 }
 0x21a   : > { %v721_v47 = vrot.slane %v708_v14, 5  ;;  %v741_v18 = vsel %vm400_vm3, %v711_v56, 0.0  ;;  %v742_v20 = vsel %vm401_vm4, %v712_v38, 0.0  ;;  %v722_v26 = vrot.slane %v707_v13, 5 }
 0x21b   : > { %v723_v10 = vrot.slane %v708_v14, 6  ;;  %v724_v61 = vrot.slane %v707_v13, 6  ;;  %v743_v40 = vsel %vm400_vm3, %v708_v14, 0.0  ;;  %v744_v37 = vsel %vm401_vm4, %v707_v13, 0.0 }
 0x21c   : > { %v745_v19 = vsel %vm400_vm3, %v713_v41, 0.0  ;;  %v746_v7 = vsel %vm401_vm4, %v714_v62, 0.0  ;;  %v747_v56 = vsel %vm400_vm3, %v715_v12, 0.0  ;;  %v748_v38 = vsel %vm401_vm4, %v716_v16, 0.0 }
 0x21d   : > { %v749_v63 = vsel %vm400_vm3, %v717_v49, 0.0  ;;  %v4165_v14 = vrot.slane %v2703_v2, 7  ;;  %v750_v41 = vsel %vm401_vm4, %v718_v23, 0.0  ;;  %v751_v62 = vsel %vm400_vm3, %v719_v29, 0.0 }
 0x21e   : > { %v752_v12 = vsel %vm401_vm4, %v720_v42, 0.0  ;;  %v753_v16 = vsel %vm400_vm3, %v721_v47, 0.0  ;;  %v754_v49 = vsel %vm401_vm4, %v722_v26, 0.0  ;;  %v777_v23 = vmul.f32 %v2703_v2, %v743_v40  ;;  %v842_v26 = vpop.permute.xlu1 %841 }
 0x21f   : > { %v775_v55 = vmul.f32 %v4165_v14, %v741_v18  ;;  %v4166_v13 = vmov %v4165_v14  ;;  %v755_v18 = vsel %vm400_vm3, %v723_v10, 0.0  ;;  %v778_v14 = vmul.f32 %v2703_v2, %v744_v37 }
 0x220   : > { %v776_v15 = vmul.f32 %v4166_v13, %v742_v20  ;;  %v756_v20 = vsel %vm401_vm4, %v724_v61, 0.0  ;;  %v4167_v29 = vrot.slane %v2703_v2, 1  ;;  %v4169_v47 = vrot.slane %v2703_v2, 2 }
 0x221   : > { %v4171_v61 = vrot.slane %v2703_v2, 3  ;;  %v807_v37 = vrot.slane %v775_v55, 1  ;;  %vm679_vm5 = vcmask 1046534   ;;  %vm682_vm7 = vcmask 1047559  }
 0x222   : > { %v779_v13 = vmul.f32 %v4167_v29, %v745_v19  ;;  %v4168_v42 = vmov %v4167_v29  ;;  %v3071_v0 = vmul.f32 %v4169_v47, %v747_v56  ;;  %v4170_v10 = vmov %v4169_v47 }
 0x223   : > { %v780_v33 = vmul.f32 %v4168_v42, %v746_v7  ;;  %v3075_v6 = vmul.f32 %v4170_v10, %v748_v38  ;;  %v3079_v40 = vmul.f32 %v4171_v61, %v749_v63  ;;  %v821_v60 = vrot.slane %v776_v15, 1 }
 0x224   : > { %v4172_v19 = vmov %v4171_v61  ;;  %v4173_v7 = vrot.slane %v2703_v2, 4  ;;  %v4175_v38 = vrot.slane %v2703_v2, 5  ;;  %v4177_v15 = vrot.slane %v2703_v2, 6 }
 0x225   : > { %v3083_v29 = vmul.f32 %v4172_v19, %v750_v41  ;;  %v809_v19 = vrot.slane %v779_v13, 7 }
 0x226   : > { %v3087_v42 = vmul.f32 %v4173_v7, %v751_v62  ;;  %v4174_v56 = vmov %v4173_v7  ;;  %v3095_v10 = vmul.f32 %v4175_v38, %v753_v16  ;;  %v4176_v63 = vmov %v4175_v38 }
 0x227   : > { %v3091_v47 = vmul.f32 %v4174_v56, %v752_v12  ;;  %v3099_v55 = vmul.f32 %v4176_v63, %v754_v49  ;;  %v3103_v41 = vmul.f32 %v4177_v15, %v755_v18  ;;  %v4178_v61 = vmov %v4177_v15 }
 0x228   : > { %v3107_v62 = vmul.f32 %v4178_v61, %v756_v20  ;;  %v845_v12 = vsel %vm843_vm10, %v842_v26, %v2752_v35  ;;  %v823_v7 = vrot.slane %v780_v33, 7  ;;  %v844_v49 = vsel %vm843_vm10, %v2752_v35, %v842_v26 }
 0x229   : > { %v808_v56 = vsel %vm664_vm6, %v777_v23, %v807_v37  ;;  %v822_v18 = vsel %vm664_vm6, %v778_v14, %v821_v60  ;;  %v848_v38 = vrot.slane %v845_v12, 6  ;;  %v850_v2 = vrot.slane %v845_v12, 7 }
 0x22a   : > { %v849_v16 = vrot.slane %v844_v49, 6  ;;  %v851_v35 = vrot.slane %v844_v49, 7  ;;  %v3126_v60 = vsel %vm667_vm8, %v809_v19, %v808_v56  ;;  %v3129_v23 = vsel %vm667_vm8, %v823_v7, %v822_v18 }
 0x22b   : > { %v852_v26 = vrot.slane %v845_v12, 1  ;;  %v853_v37 = vrot.slane %v844_v49, 1  ;;  %v854_v15 = vrot.slane %v845_v12, 2  ;;  %v878_v63 = vsel %vm400_vm3, %v848_v38, 0.0 }
 0x22c   : > { %v880_v61 = vsel %vm400_vm3, %v850_v2, 0.0  ;;  %v855_v33 = vrot.slane %v844_v49, 2  ;;  %v856_v20 = vrot.slane %v845_v12, 3  ;;  %v857_v13 = vrot.slane %v844_v49, 3 }
 0x22d   : > { %v858_v44 = vrot.slane %v845_v12, 4  ;;  %v859_v19 = vrot.slane %v844_v49, 4  ;;  %v860_v56 = vrot.slane %v845_v12, 5  ;;  %v879_v7 = vsel %vm401_vm4, %v849_v16, 0.0 }
 0x22e   : > { %v881_v18 = vsel %vm401_vm4, %v851_v35, 0.0  ;;  %v861_v14 = vrot.slane %v844_v49, 5  ;;  %v882_v22 = vsel %vm400_vm3, %v845_v12, 0.0  ;;  %v4179_v38 = vrot.slane %v2707_v4, 6 }
 0x22f   : > { %v4180_v2 = vrot.slane %v2707_v4, 7  ;;  %v883_v45 = vsel %vm401_vm4, %v844_v49, 0.0  ;;  %v884_v46 = vsel %vm400_vm3, %v852_v26, 0.0  ;;  %v885_v16 = vsel %vm401_vm4, %v853_v37, 0.0  ;;  %v1116_v37 = vpop.permute.xlu1 %1115 }
 0x230   : > { %v912_v53 = vmul.f32 %v4179_v38, %v878_v63  ;;  %v886_v35 = vsel %vm400_vm3, %v854_v15, 0.0  ;;  %v888_v12 = vsel %vm400_vm3, %v856_v20, 0.0  ;;  %v890_v63 = vsel %vm400_vm3, %v858_v44, 0.0 }
 0x231   : > { %v914_v52 = vmul.f32 %v4180_v2, %v880_v61  ;;  %v4181_v61 = vmov %v4179_v38  ;;  %v4182_v49 = vmov %v4180_v2  ;;  %v887_v26 = vsel %vm401_vm4, %v855_v33, 0.0 }
 0x232   : > { %v913_v38 = vmul.f32 %v4181_v61, %v879_v7  ;;  %v915_v2 = vmul.f32 %v4182_v49, %v881_v18  ;;  %v889_v15 = vsel %vm401_vm4, %v857_v13, 0.0  ;;  %v891_v20 = vsel %vm401_vm4, %v859_v19, 0.0 }
 0x233   : > { %v3171_v44 = vsel %vm400_vm3, %v860_v56, 0.0  ;;  %v4184_v7 = vrot.slane %v2707_v4, 1  ;;  %v4185_v18 = vrot.slane %v2707_v4, 2  ;;  %v944_v33 = vrot.slane %v912_v53, 2 }
 0x234   : > { %4183 = vst [vmem:[#allocation35_spill] sm:$0xff] %v3171_v44  ;;  %v945_v17 = vrot.slane %v914_v52, 1  ;;  %v3183_v13 = vsel %vm401_vm4, %v861_v14, 0.0  ;;  %v4187_v56 = vrot.slane %v2707_v4, 3  ;;  %v958_v53 = vrot.slane %v913_v38, 2 }
 0x235   : > { %v3175_v61 = vmul.f32 %v4184_v7, %v884_v46  ;;  %v3179_v49 = vmul.f32 %v4185_v18, %v886_v35  ;;  %v4186_v19 = vmov %v4184_v7  ;;  %v4189_v46 = vrot.slane %v2707_v4, 4 }
 0x236   : > { %v3187_v1 = vmul.f32 %v4186_v19, %v885_v16  ;;  %v3191_v54 = vmul.f32 %v4187_v56, %v888_v12  ;;  %v916_v35 = vmul.f32 %v2707_v4, %v882_v22  ;;  %v959_v52 = vrot.slane %v915_v2, 1 }
 0x237   : > { %v3195_v7 = vmul.f32 %v4189_v46, %v890_v63  ;;  %v3201_v14 = vsel %vm1117_vm11, %v2754_v36, %v1116_v37  ;;  %v917_v16 = vmul.f32 %v2707_v4, %v883_v45  ;;  %v3206_v19 = vmul.f32 %v4185_v18, %v887_v26 }
 0x238   : > { %4188 = vst [vmem:[#allocation36_spill] sm:$0xff] %v3191_v54  ;;  %v4191_v12 = vmov %v4187_v56  ;;  %v4192_v63 = vmov %v4189_v46  ;;  %v946_v38 = vsel %vm664_vm6, %v945_v17, %v944_v33  ;;  %v3222_v45 = vsel %vm1117_vm11, %v1116_v37, %v2754_v36  ;;  %v1253_v46 = vpop.permute.xlu1 %1252 }
 0x239   : > { %4190 = vst [vmem:[#allocation37_spill] sm:$0xff] %v3195_v7  ;;  %v3210_v56 = vmul.f32 %v4191_v12, %v889_v15  ;;  %v3214_v22 = vmul.f32 %v4192_v63, %v891_v20  ;;  %4194 = vst [vmem:[#allocation39_spill] sm:$0xff] %v3222_v45  ;;  %v1122_v20 = vrot.slane %v3201_v14, 4  ;;  %v960_v12 = vsel %vm664_vm6, %v959_v52, %v958_v53 }
 0x23a   : > { %v1124_v17 = vrot.slane %v3201_v14, 5  ;;  %v1126_v33 = vrot.slane %v3201_v14, 6  ;;  %v1128_v63 = vrot.slane %v3201_v14, 7  ;;  %v3233_v36 = vsel %vm667_vm8, %v916_v35, %v946_v38 }
 0x23b   : > { %4193 = vst [vmem:[#allocation38_spill] sm:$0xff] %v3214_v22  ;;  %v1123_v15 = vrot.slane %v3222_v45, 4  ;;  %v1125_v26 = vrot.slane %v3222_v45, 5  ;;  %v1127_v52 = vrot.slane %v3222_v45, 6  ;;  %v1129_v2 = vrot.slane %v3222_v45, 7 }
 0x23c   : > { %v3243_v7 = vsel %vm667_vm8, %v917_v16, %v960_v12  ;;  %v1130_v35 = vrot.slane %v3201_v14, 1  ;;  %v1152_v38 = vsel %vm400_vm3, %v1122_v20, 0.0  ;;  %v3251_v37 = vsel %vm1254_vm12, %v2804_v51, %v1253_v46 }
 0x23d   : > { %4195 = vst [vmem:[#allocation40_spill] sm:$0xff] %v3251_v37  ;;  %v1131_v18 = vrot.slane %v3222_v45, 1  ;;  %v1154_v53 = vsel %vm400_vm3, %v1124_v17, 0.0  ;;  %v1156_v58 = vsel %vm400_vm3, %v1126_v33, 0.0  ;;  %v1158_v16 = vsel %vm400_vm3, %v1128_v63, 0.0 }
 0x23e   : > { %v1153_v22 = vsel %vm401_vm4, %v1123_v15, 0.0  ;;  %v1155_v59 = vsel %vm401_vm4, %v1125_v26, 0.0  ;;  %v1157_v31 = vsel %vm401_vm4, %v1127_v52, 0.0  ;;  %v1159_v17 = vsel %vm401_vm4, %v1129_v2, 0.0 }
 0x23f   : > { %v1160_v33 = vsel %vm400_vm3, %v3201_v14, 0.0  ;;  %v4196_v63 = vrot.slane %v2705_v3, 4  ;;  %v1161_v15 = vsel %vm401_vm4, %v3222_v45, 0.0  ;;  %v4198_v26 = vrot.slane %v2705_v3, 5 }
 0x240   : > { %v4200_v52 = vrot.slane %v2705_v3, 6  ;;  %v4202_v2 = vrot.slane %v2705_v3, 7  ;;  %v3297_v57 = vsel %vm400_vm3, %v1130_v35, 0.0  ;;  %v3318_v35 = vsel %vm1254_vm12, %v1253_v46, %v2804_v51 }
 0x241   : > { %v3275_v12 = vmul.f32 %v4196_v63, %v1152_v38  ;;  %v3282_v20 = vmul.f32 %v4198_v26, %v1154_v53  ;;  %4204 = vst [vmem:[#allocation45_spill] sm:$0xff] %v3297_v57  ;;  %v3301_v53 = vsel %vm401_vm4, %v1131_v18, 0.0  ;;  %v4212_v18 = vrot.slane %v2705_v3, 7  ;;  %v1388_v57 = vpop.permute.xlu0 %1387 }
 0x242   : > { %v3286_v54 = vmul.f32 %v4200_v52, %v1156_v58  ;;  %v3290_v44 = vmul.f32 %v4202_v2, %v1158_v16  ;;  %4205 = vst [vmem:[#allocation46_spill] sm:$0xff] %v3301_v53  ;;  %v4206_v58 = vmov %v4196_v63  ;;  %v4208_v16 = vrot.slane %v2705_v3, 5 }
 0x243   : > { %4197 = vst [vmem:[#allocation41_spill] sm:$0xff] %v3275_v12  ;;  %4199 = vst [vmem:[#allocation42_spill] sm:$0xff] %v3282_v20  ;;  %v3305_v26 = vmul.f32 %v4206_v58, %v1153_v22  ;;  %v4210_v2 = vrot.slane %v2705_v3, 6  ;;  %v3322_v63 = vmul.f32 %v4212_v18, %v1159_v17  ;;  %v3325_v22 = vmul.f32 %v2705_v3, %v1160_v33 }
 0x244   : > { %4201 = vst [vmem:[#allocation43_spill] sm:$0xff] %v3286_v54  ;;  %4203 = vst [vmem:[#allocation44_spill] sm:$0xff] %v3290_v44  ;;  %v3309_v52 = vmul.f32 %v4208_v16, %v1155_v59  ;;  %v3328_v58 = vmul.f32 %v2705_v3, %v1161_v15  ;;  %v1259_v51 = vrot.slane %v3251_v37, 3  ;;  %v1260_v46 = vrot.slane %v3318_v35, 3  ;;  %v1390_v3 = vpop.permute.xlu1 %1389 }
 0x245   : > { %4207 = vst [vmem:[#allocation47_spill] sm:$0xff] %v3305_v26  ;;  %v3313_v38 = vmul.f32 %v4210_v2, %v1157_v31  ;;  %4213 = vst [vmem:[#allocation50_spill] sm:$0xff] %v3322_v63  ;;  %v1261_v17 = vrot.slane %v3251_v37, 4  ;;  %v1262_v33 = vrot.slane %v3318_v35, 4  ;;  %v1263_v18 = vrot.slane %v3251_v37, 5 }
 0x246   : > { %4209 = vst [vmem:[#allocation48_spill] sm:$0xff] %v3309_v52  ;;  %4214 = vst [vmem:[#allocation51_spill] sm:$0xff] %v3325_v22  ;;  %v1264_v15 = vrot.slane %v3318_v35, 5  ;;  %v1265_v59 = vrot.slane %v3251_v37, 6  ;;  %v1266_v31 = vrot.slane %v3318_v35, 6  ;;  %v1267_v16 = vrot.slane %v3251_v37, 7 }
 0x247   : > { %4211 = vst [vmem:[#allocation49_spill] sm:$0xff] %v3313_v38  ;;  %4215 = vst [vmem:[#allocation52_spill] sm:$0xff] %v3328_v58  ;;  %v1268_v44 = vrot.slane %v3318_v35, 7  ;;  %v1289_v12 = vsel %vm400_vm3, %v1259_v51, 0.0  ;;  %v1290_v2 = vsel %vm401_vm4, %v1260_v46, 0.0  ;;  %v1291_v58 = vsel %vm400_vm3, %v1261_v17, 0.0 }
 0x248   : > { %v1292_v22 = vsel %vm401_vm4, %v1262_v33, 0.0  ;;  %v1293_v54 = vsel %vm400_vm3, %v1263_v18, 0.0  ;;  %v1294_v20 = vsel %vm401_vm4, %v1264_v15, 0.0  ;;  %v1295_v51 = vsel %vm400_vm3, %v1265_v59, 0.0  ;;  %v1527_v45 = vpop.permute.xlu1 %1526 }
 0x249   : > { %v1296_v63 = vsel %vm401_vm4, %v1266_v31, 0.0  ;;  %v3369_v46 = vsel %vm400_vm3, %v1267_v16, 0.0  ;;  %v3373_v17 = vsel %vm401_vm4, %v1268_v44, 0.0  ;;  %v4218_v33 = vrot.slane %v2709_v5, 3 }
 0x24a   : > { %4216 = vst [vmem:[#allocation53_spill] sm:$0xff] %v3369_v46  ;;  %4217 = vst [vmem:[#allocation54_spill] sm:$0xff] %v3373_v17  ;;  %v3381_v15 = vsel %vm1391_vm13, %v1388_v57, %v1390_v3  ;;  %v3385_v59 = vsel %vm1391_vm13, %v1390_v3, %v1388_v57  ;;  %v4221_v46 = vrot.slane %v2709_v5, 4  ;;  %v4222_v17 = vrot.slane %v2709_v5, 5 }
 0x24b   : > { %v3377_v18 = vmul.f32 %v4218_v33, %v1289_v12  ;;  %v4219_v31 = vmov %v4218_v33  ;;  %v1396_v33 = vrot.slane %v3381_v15, 2 }
 0x24c   : > { %v3389_v16 = vmul.f32 %v4219_v31, %v1290_v2  ;;  %v3393_v44 = vmul.f32 %v4221_v46, %v1291_v58  ;;  %v3397_v12 = vmul.f32 %v4222_v17, %v1293_v54  ;;  %v4224_v38 = vmov %v4221_v46 }
 0x24d   : > { %v3402_v52 = vmul.f32 %v4224_v38, %v1292_v22  ;;  %v4226_v3 = vmov %v4222_v17  ;;  %v4228_v2 = vrot.slane %v2709_v5, 6  ;;  %v1398_v58 = vrot.slane %v3381_v15, 3 }
 0x24e   : > { %4220 = vst [vmem:[#allocation55_spill] sm:$0xff] %v3389_v16  ;;  %4223 = vst [vmem:[#allocation56_spill] sm:$0xff] %v3397_v12  ;;  %v3406_v57 = vmul.f32 %v4226_v3, %v1294_v20  ;;  %v3416_v54 = vsel %vm400_vm3, %v3251_v37, 0.0  ;;  %v1397_v46 = vrot.slane %v3385_v59, 2  ;;  %v1399_v38 = vrot.slane %v3385_v59, 3  ;;  %v1525_v3 = vpop.permute.xlu0 %1524 }
 0x24f   : > { %4225 = vst [vmem:[#allocation57_spill] sm:$0xff] %v3402_v52  ;;  %v3410_v31 = vmul.f32 %v4228_v2, %v1295_v51  ;;  %4230 = vst [vmem:[#allocation60_spill] sm:$0xff] %v3416_v54  ;;  %v1400_v22 = vrot.slane %v3381_v15, 4  ;;  %v3424_v20 = vsel %vm401_vm4, %v3318_v35, 0.0  ;;  %v4232_v51 = vmov %v4228_v2 }
 0x250   : > { %4227 = vst [vmem:[#allocation58_spill] sm:$0xff] %v3406_v57  ;;  %4231 = vst [vmem:[#allocation61_spill] sm:$0xff] %v3424_v20  ;;  %v3428_v17 = vmul.f32 %v4232_v51, %v1296_v63  ;;  %v1401_v2 = vrot.slane %v3385_v59, 4  ;;  %v1426_v53 = vsel %vm400_vm3, %v1396_v33, 0.0  ;;  %v1428_v51 = vsel %vm400_vm3, %v1398_v58, 0.0 }
 0x251   : > { %4229 = vst [vmem:[#allocation59_spill] sm:$0xff] %v3410_v31  ;;  %v1402_v54 = vrot.slane %v3381_v15, 5  ;;  %v1427_v37 = vsel %vm401_vm4, %v1397_v46, 0.0  ;;  %v1429_v33 = vsel %vm401_vm4, %v1399_v38, 0.0  ;;  %v1430_v20 = vsel %vm400_vm3, %v1400_v22, 0.0 }
 0x252   : > { %v1403_v5 = vrot.slane %v3385_v59, 5  ;;  %v1431_v63 = vsel %vm401_vm4, %v1401_v2, 0.0  ;;  %v4233_v58 = vrot.slane %v2711_v8, 2  ;;  %v3458_v31 = vsel %vm1528_vm14, %v1525_v3, %v1527_v45 }
 0x253   : > { %v4235_v22 = vrot.slane %v2711_v8, 3  ;;  %v3468_v12 = vsel %vm1528_vm14, %v1527_v45, %v1525_v3  ;;  %v4240_v38 = vrot.slane %v2711_v8, 4 }
 0x254   : > { %v3454_v26 = vmul.f32 %v4233_v58, %v1426_v53  ;;  %v4237_v53 = vmov %v4233_v58  ;;  %v1538_v11 = vrot.slane %v3468_v12, 3 }
 0x255   : > { %v3464_v57 = vmul.f32 %v4235_v22, %v1428_v51  ;;  %v3473_v58 = vmul.f32 %v4237_v53, %v1427_v37  ;;  %v4238_v52 = vmov %v4235_v22  ;;  %v3481_v46 = vmul.f32 %v4240_v38, %v1430_v20 }
 0x256   : > { %4234 = vst [vmem:[#allocation62_spill] sm:$0xff] %v3454_v26  ;;  %v3477_v16 = vmul.f32 %v4238_v52, %v1429_v33  ;;  %v4241_v45 = vmov %v4240_v38  ;;  %v1533_v37 = vrot.slane %v3458_v31, 1  ;;  %v3492_v22 = vsel %vm400_vm3, %v1402_v54, 0.0 }
 0x257   : > { %4236 = vst [vmem:[#allocation63_spill] sm:$0xff] %v3464_v57  ;;  %v3487_v3 = vmul.f32 %v4241_v45, %v1431_v63  ;;  %v3496_v52 = vsel %vm401_vm4, %v1403_v5, 0.0  ;;  %v1534_v33 = vrot.slane %v3468_v12, 1  ;;  %v1535_v53 = vrot.slane %v3458_v31, 2 }
 0x258   : > { %4239 = vst [vmem:[#allocation64_spill] sm:$0xff] %v3477_v16  ;;  %v1536_v63 = vrot.slane %v3468_v12, 2  ;;  %v1537_v45 = vrot.slane %v3458_v31, 3  ;;  %v1563_v38 = vsel %vm400_vm3, %v1533_v37, 0.0  ;;  %v4242_v57 = vrot.slane %v2984_v50, 4 }
 0x259   : > { %v1540_v54 = vrot.slane %v3468_v12, 4  ;;  %v1541_v51 = vrot.slane %v3458_v31, 5  ;;  %v1564_v5 = vsel %vm401_vm4, %v1534_v33, 0.0  ;;  %v4243_v16 = vrot.slane %v2988_v21, 3 }
 0x25a   : > { %v691_v26 = vsel %vm673_vm15, %v4242_v57, %v3024_v48  ;;  %v1565_v2 = vsel %vm400_vm3, %v1535_v53, 0.0  ;;  %v1566_v37 = vsel %vm401_vm4, %v1536_v63, 0.0  ;;  %v1567_v50 = vsel %vm400_vm3, %v1537_v45, 0.0 }
 0x25b   : > { %v693_v20 = vsel %vm676_vm2, %v4243_v16, %v691_v26  ;;  %v4244_v48 = vrot.slane %v3071_v0, 6  ;;  %v1568_v33 = vsel %vm401_vm4, %v1538_v11, 0.0  ;;  %v4245_v21 = vrot.slane %v2713_v9, 1 }
 0x25c   : > { %v4246_v16 = vrot.slane %v2965_v27, 4  ;;  %v4247_v63 = vrot.slane %v3075_v6, 6  ;;  %v4249_v11 = vrot.slane %v2993_v25, 2  ;;  %v4251_v27 = vrot.slane %v3083_v29, 5 }
 0x25d   : > { %v812_v57 = vsel %vm670_vm9, %v4244_v48, %v3126_v60  ;;  %v3537_v26 = vmul.f32 %v4245_v21, %v1563_v38  ;;  %v4248_v0 = vmov %v4245_v21  ;;  %v4250_v38 = vrot.slane %v3079_v40, 5 }
 0x25e   : > { %v674_v53 = vsel %vm673_vm15, %v4246_v16, %v3018_v30  ;;  %v826_v45 = vsel %vm670_vm9, %v4247_v63, %v3129_v23  ;;  %v3549_v60 = vmul.f32 %v4248_v0, %v1564_v5  ;;  %v695_v48 = vsel %vm679_vm5, %v4249_v11, %v693_v20 }
 0x25f   : > { %v814_v21 = vsel %vm673_vm15, %v4250_v38, %v812_v57  ;;  %v828_v30 = vsel %vm673_vm15, %v4251_v27, %v826_v45  ;;  %v1542_v6 = vrot.slane %v3468_v12, 5  ;;  %v4252_v23 = vrot.slane %v2713_v9, 2 }
 0x260   : > { %v4254_v25 = vrot.slane %v3091_v47, 4  ;;  %v4255_v20 = vrot.slane %v2713_v9, 3  ;;  %v4256_v29 = vrot.slane %v2969_v28, 3 }
 0x261   : > { %v3563_v16 = vmul.f32 %v4252_v23, %v1565_v2  ;;  %v4253_v5 = vmov %v4252_v23  ;;  %v4257_v2 = vrot.slane %v3175_v61, 7  ;;  %v4262_v61 = vrot.slane %v3206_v19, 6 }
 0x262   : > { %v3567_v63 = vmul.f32 %v4253_v5, %v1566_v37  ;;  %v830_v40 = vsel %vm676_vm2, %v4254_v25, %v828_v30  ;;  %v3574_v57 = vmul.f32 %v4255_v20, %v1567_v50  ;;  %v677_v45 = vsel %vm676_vm2, %v4256_v29, %v674_v53  ;;  %v4269_v29 = vld [vmem:[#allocation21_spill] sm:$0xff] }
 0x263   : > { %v949_v0 = vsel %vm670_vm9, %v4257_v2, %v3233_v36  ;;  %v4258_v37 = vrot.slane %v3187_v1, 7  ;;  %v4259_v11 = vmov %v4255_v20  ;;  %v4260_v50 = vrot.slane %v2997_v39, 1 }
 0x264   : > { %v3589_v38 = vmul.f32 %v4259_v11, %v1568_v33  ;;  %v4261_v53 = vrot.slane %v3087_v42, 4  ;;  %v1629_v1 = vrot.slane %v3537_v26, 7  ;;  %v4263_v30 = vrot.slane %v3099_v55, 3  ;;  %v4276_v11 = vld [vmem:[#allocation23_spill] sm:$0xff] }
 0x265   : > { %v963_v47 = vsel %vm670_vm9, %v4258_v37, %v3243_v7  ;;  %v697_v28 = vsel %vm682_vm7, %v4260_v50, %v695_v48  ;;  %v4264_v39 = vrot.slane %v3179_v49, 6  ;;  %v4265_v42 = vrot.slane %v2973_v24, 2 }
 0x266   : > { %v816_v27 = vsel %vm676_vm2, %v4261_v53, %v814_v21  ;;  %v965_v36 = vsel %vm673_vm15, %v4262_v61, %v963_v47  ;;  %v832_v33 = vsel %vm679_vm5, %v4263_v30, %v830_v40  ;;  %v819_v19 = vrot.slane %v3103_v41, 2  ;;  %v4275_v47 = vld [vmem:[#allocation32_spill] sm:$0xff] }
 0x267   : > { %v951_v48 = vsel %vm673_vm15, %v4264_v39, %v949_v0  ;;  %v680_v21 = vsel %vm679_vm5, %v4265_v42, %v677_v45  ;;  %v833_v23 = vrot.slane %v3107_v62, 2  ;;  %v4266_v5 = vrot.slane %v3210_v56, 5  ;;  %v4271_v56 = vld [vmem:[#allocation35_spill] sm:$0xff]  ;;  %v4280_v61 = vld [vmem:[#allocation20_spill] sm:$0xff] }
 0x268   : > { %v701_v55 = vadd.f32 %v697_v28, %v2750_v34  ;;  %v4267_v40 = vrot.slane %v3095_v10, 3  ;;  %v4268_v20 = vrot.slane %v2707_v4, 5  ;;  %v4270_v45 = vrot.slane %v4269_v29, 4  ;;  %v4273_v34 = vld [vmem:[#allocation36_spill] sm:$0xff]  ;;  %v4278_v28 = vld [vmem:[#allocation38_spill] sm:$0xff] }
 0x269   : > { %v967_v25 = vsel %vm676_vm2, %v4266_v5, %v965_v36  ;;  %v834_v62 = vsel %vm682_vm7, %v833_v23, %v832_v33  ;;  %v4274_v37 = vrot.slane %v4273_v34, 5  ;;  %v4277_v50 = vrot.slane %v4276_v11, 1  ;;  %v4282_v4 = vld [vmem:[#allocation22_spill] sm:$0xff]  ;;  %v4283_v33 = vld [vmem:[#allocation16_spill] sm:$0xff] }
 0x26a   : > { %v818_v49 = vsel %vm679_vm5, %v4267_v40, %v816_v27  ;;  %v927_v24 = vmul.f32 %v4268_v20, %v3183_v13  ;;  %v1030_v41 = vsel %vm401_vm4, %v4270_v45, 0.0  ;;  %v4272_v2 = vmov %v4268_v20  ;;  %v4285_v23 = vld [vmem:[#allocation34_spill] sm:$0xff]  ;;  %v4288_v20 = vld [vmem:[#allocation27_spill] sm:$0xff] }
 0x26b   : > { %v926_v0 = vmul.f32 %v4272_v2, %v4271_v56  ;;  %v953_v10 = vsel %vm676_vm2, %v4274_v37, %v951_v48  ;;  %v1085_v13 = vsel %vm667_vm8, %v4277_v50, %v4275_v47  ;;  %v4279_v53 = vrot.slane %v4278_v28, 4  ;;  %v4286_v48 = vld [vmem:[#allocation26_spill] sm:$0xff]  ;;  %v4292_v37 = vld [vmem:[#allocation31_spill] sm:$0xff]  ;;  %v4293_v28 = vld [vmem:[#allocation33_spill] sm:$0xff] }
 0x26c   : > { %v4281_v36 = vrot.slane %v4280_v61, 4  ;;  %v4284_v39 = vrot.slane %v4283_v33, 3  ;;  %v4287_v5 = vrot.slane %v4286_v48, 1  ;;  %v4291_v2 = vld [vmem:[#allocation30_spill] sm:$0xff]  ;;  %v1630_v11 = vrot.slane %v3563_v16, 6 }
 0x26d   : > { %v969_v27 = vsel %vm679_vm5, %v4279_v53, %v967_v25  ;;  %v4290_v25 = vrot.slane %v4283_v33, 4  ;;  %v1086_v34 = vsel %vm670_vm9, %v4291_v2, %v1085_v13  ;;  %v4294_v53 = vrot.slane %v4293_v28, 1  ;;  %v4299_v2 = vld [vmem:[#allocation24_spill] sm:$0xff]  ;;  %v4306_v33 = vld [vmem:[#allocation46_spill] sm:$0xff] }
 0x26e   : > { %v1029_v30 = vsel %vm400_vm3, %v4281_v36, 0.0  ;;  %v1061_v42 = vmul.f32 %v4284_v39, %v4282_v4  ;;  %v1099_v40 = vsel %vm667_vm8, %v4287_v5, %v4285_v23  ;;  %v4289_v29 = vmov %v4284_v39  ;;  %v4295_v23 = vld [vmem:[#allocation28_spill] sm:$0xff]  ;;  %v4297_v5 = vld [vmem:[#allocation37_spill] sm:$0xff]  ;;  %v4331_v50 = vld [vmem:[#allocation50_spill] sm:$0xff] }
 0x26f   : > { %v1062_v45 = vmul.f32 %v4289_v29, %v4288_v20  ;;  %v1064_v56 = vmul.f32 %v4290_v25, %v1030_v41  ;;  %v1100_v47 = vsel %vm670_vm9, %v4292_v37, %v1099_v40  ;;  %v3666_v61 = vsel %vm682_vm7, %v4294_v53, %v680_v21 }
 0x270   : > { %v970_v36 = vrot.slane %v927_v24, 3  ;;  %v3669_v4 = vsel %vm682_vm7, %v819_v19, %v818_v49  ;;  %v838_v41 = vadd.f32 %v834_v62, %v701_v55  ;;  %v956_v39 = vrot.slane %v926_v0, 3 }
 0x271   : > { %v4296_v13 = vrot.slane %v4295_v23, 7  ;;  %v4298_v40 = vrot.slane %v4297_v5, 4  ;;  %v1063_v21 = vmul.f32 %v4290_v25, %v1029_v30  ;;  %v4300_v24 = vrot.slane %v4299_v2, 7  ;;  %v4311_v23 = vld [vmem:[#allocation42_spill] sm:$0xff] }
 0x272   : > { %v971_v29 = vsel %vm682_vm7, %v970_v36, %v969_v27  ;;  %v1091_v49 = vrot.slane %v1061_v42, 5  ;;  %v1105_v55 = vrot.slane %v1062_v45, 5  ;;  %v1107_v62 = vrot.slane %v1064_v56, 4  ;;  %v4304_v27 = vld [vmem:[#allocation39_spill] sm:$0xff]  ;;  %v4307_v36 = vld [vmem:[#allocation17_spill] sm:$0xff] }
 0x273   : > { %v1102_v48 = vsel %vm673_vm15, %v4296_v13, %v1100_v47  ;;  %v955_v20 = vsel %vm679_vm5, %v4298_v40, %v953_v10  ;;  %v1088_v19 = vsel %vm673_vm15, %v4300_v24, %v1086_v34  ;;  %v4301_v0 = vrot.slane %v3201_v14, 2  ;;  %v4302_v47 = vld [vmem:[#allocation29_spill] sm:$0xff] }
 0x274   : > { %v4303_v28 = vrot.slane %v4302_v47, 6  ;;  %v4305_v53 = vrot.slane %v4304_v27, 2  ;;  %v4308_v34 = vrot.slane %v4307_v36, 1  ;;  %v4309_v45 = vld [vmem:[#allocation41_spill] sm:$0xff]  ;;  %v4312_v13 = vrot.slane %v4311_v23, 3 }
 0x275   : > { %v1164_v37 = vsel %vm400_vm3, %v4301_v0, 0.0  ;;  %v4310_v56 = vrot.slane %v4309_v45, 4  ;;  %v4313_v40 = vld [vmem:[#allocation25_spill] sm:$0xff]  ;;  %v4316_v0 = vld [vmem:[#allocation43_spill] sm:$0xff]  ;;  %v4332_v7 = vrot.slane %v4331_v50, 1 }
 0x276   : > { %v1104_v10 = vsel %vm676_vm2, %v4303_v28, %v1102_v48  ;;  %v1165_v30 = vsel %vm401_vm4, %v4305_v53, 0.0  ;;  %v1197_v42 = vmul.f32 %v4308_v34, %v4306_v33  ;;  %v4314_v25 = vrot.slane %v4313_v40, 6  ;;  %v4318_v53 = vld [vmem:[#allocation47_spill] sm:$0xff]  ;;  %v4320_v34 = vld [vmem:[#allocation48_spill] sm:$0xff] }
 0x277   : > { %v1220_v5 = vsel %vm664_vm6, %v4312_v13, %v4310_v56  ;;  %v4315_v48 = vrot.slane %v4304_v27, 3  ;;  %v4317_v47 = vrot.slane %v4316_v0, 2  ;;  %v4319_v33 = vrot.slane %v4318_v53, 4  ;;  %v4323_v13 = vld [vmem:[#allocation45_spill] sm:$0xff] }
 0x278   : > { %v1090_v2 = vsel %vm676_vm2, %v4314_v25, %v1088_v19  ;;  %v4321_v45 = vrot.slane %v4320_v34, 3  ;;  %v4322_v56 = vrot.slane %v3201_v14, 3  ;;  %v4324_v27 = vrot.slane %v4307_v36, 1  ;;  %v4325_v25 = vld [vmem:[#allocation44_spill] sm:$0xff] }
 0x279   : > { %v1167_v24 = vsel %vm401_vm4, %v4315_v48, 0.0  ;;  %v1222_v28 = vsel %vm667_vm8, %v4317_v47, %v1220_v5  ;;  %v4326_v48 = vrot.slane %v4325_v25, 1  ;;  %v4327_v5 = vld [vmem:[#allocation49_spill] sm:$0xff]  ;;  %v1106_v34 = vsel %vm679_vm5, %v1105_v55, %v1104_v10 }
 0x27a   : > { %v1234_v23 = vsel %vm664_vm6, %v4321_v45, %v4319_v33  ;;  %v1166_v19 = vsel %vm400_vm3, %v4322_v56, 0.0  ;;  %v1196_v40 = vmul.f32 %v4324_v27, %v4323_v13  ;;  %v4328_v47 = vrot.slane %v4327_v5, 2 }
 0x27b   : > { %v1224_v0 = vsel %vm670_vm9, %v4326_v48, %v1222_v28  ;;  %v4329_v33 = vrot.slane %v4307_v36, 2  ;;  %v4333_v27 = vrot.slane %v4307_v36, 3  ;;  %v4334_v28 = vld [vmem:[#allocation52_spill] sm:$0xff]  ;;  %v1240_v5 = vrot.slane %v1197_v42, 7  ;;  %v4340_v36 = vld [vmem:[#allocation18_spill] sm:$0xff] }
 0x27c   : > { %v1236_v53 = vsel %vm667_vm8, %v4328_v47, %v1234_v23  ;;  %v4335_v23 = vld [vmem:[#allocation40_spill] sm:$0xff]  ;;  %v3744_v55 = vsel %vm682_vm7, %v956_v39, %v955_v20  ;;  %v1093_v10 = vrot.slane %v1063_v21, 4  ;;  %v1092_v50 = vsel %vm679_vm5, %v1091_v49, %v1090_v2  ;;  %v4339_v2 = vld [vmem:[#allocation54_spill] sm:$0xff] }
 0x27d   : > { %v1198_v14 = vmul.f32 %v4329_v33, %v1164_v37  ;;  %v4330_v45 = vmov %v4329_v33  ;;  %v1238_v13 = vsel %vm670_vm9, %v4332_v7, %v1236_v53  ;;  %v1201_v25 = vmul.f32 %v4333_v27, %v1167_v24  ;;  %v4336_v33 = vld [vmem:[#allocation51_spill] sm:$0xff] }
 0x27e   : > { %v1199_v56 = vmul.f32 %v4330_v45, %v1165_v30  ;;  %v1239_v48 = vsel %vm673_vm15, %v4334_v28, %v1238_v13  ;;  %v1271_v47 = vrot.slane %v4335_v23, 2  ;;  %v975_v37 = vadd.f32 %v971_v29, %v838_v41  ;;  %v4346_v28 = vld [vmem:[#allocation57_spill] sm:$0xff] }
 0x27f   : > { %v1225_v30 = vsel %vm673_vm15, %v4336_v33, %v1224_v0  ;;  %v1108_v7 = vsel %vm682_vm7, %v1107_v62, %v1106_v34  ;;  %v1226_v53 = vrot.slane %v1196_v40, 7  ;;  %v1241_v24 = vsel %vm676_vm2, %v1240_v5, %v1239_v48  ;;  %v4349_v33 = vld [vmem:[#allocation53_spill] sm:$0xff] }
 0x280   : > { %v4337_v45 = vmov %v4333_v27  ;;  %v1228_v13 = vrot.slane %v1198_v14, 6  ;;  %v1242_v27 = vrot.slane %v1199_v56, 6  ;;  %v1272_v39 = vrot.slane %v3318_v35, 2  ;;  %v4344_v56 = vld [vmem:[#allocation55_spill] sm:$0xff] }
 0x281   : > { %v1200_v42 = vmul.f32 %v4337_v45, %v1166_v19  ;;  %v1227_v41 = vsel %vm676_vm2, %v1226_v53, %v1225_v30  ;;  %v1244_v20 = vrot.slane %v1201_v25, 5  ;;  %v4338_v29 = vrot.slane %v4335_v23, 1  ;;  %v4353_v45 = vld [vmem:[#allocation58_spill] sm:$0xff] }
 0x282   : > { %v1303_v49 = vsel %vm400_vm3, %v1271_v47, 0.0  ;;  %v1243_v62 = vsel %vm679_vm5, %v1242_v27, %v1241_v24  ;;  %v4341_v19 = vrot.slane %v4340_v36, 7  ;;  %v4342_v0 = vrot.slane %v3377_v18, 5  ;;  %v4351_v18 = vld [vmem:[#allocation56_spill] sm:$0xff] }
 0x283   : > { %v1301_v21 = vsel %vm400_vm3, %v4338_v29, 0.0  ;;  %v4343_v34 = vrot.slane %v3393_v44, 4  ;;  %v4345_v25 = vrot.slane %v4344_v56, 5  ;;  %v4347_v48 = vrot.slane %v4346_v28, 4 }
 0x284   : > { %v1332_v40 = vmul.f32 %v4341_v19, %v4339_v2  ;;  %v4348_v23 = vrot.slane %v3318_v35, 1  ;;  %v4350_v30 = vmov %v4341_v19  ;;  %v4352_v24 = vrot.slane %v4351_v18, 3 }
 0x285   : > { %v1357_v14 = vsel %vm664_vm6, %v4343_v34, %v4342_v0  ;;  %v1371_v5 = vsel %vm664_vm6, %v4347_v48, %v4345_v25  ;;  %v1331_v53 = vmul.f32 %v4350_v30, %v4349_v33  ;;  %v4354_v27 = vrot.slane %v4353_v45, 3 }
 0x286   : > { %v1302_v47 = vsel %vm401_vm4, %v4348_v23, 0.0  ;;  %v1359_v44 = vsel %vm667_vm8, %v4352_v24, %v1357_v14  ;;  %v1112_v2 = vadd.f32 %v1108_v7, %v975_v37  ;;  %v1229_v19 = vsel %vm679_vm5, %v1228_v13, %v1227_v41 }
 0x287   : > { %v1373_v29 = vsel %vm667_vm8, %v4354_v27, %v1371_v5  ;;  %v1230_v0 = vrot.slane %v1200_v42, 5  ;;  %v1304_v35 = vsel %vm401_vm4, %v1272_v39, 0.0  ;;  %v1245_v34 = vsel %vm682_vm7, %v1244_v20, %v1243_v62  ;;  %v4359_v39 = vld [vmem:[#allocation59_spill] sm:$0xff] }
 0x288   : > { %v4355_v56 = vrot.slane %v4340_v36, 1  ;;  %v4356_v28 = vrot.slane %v4340_v36, 2  ;;  %v4357_v48 = vrot.slane %v3428_v17, 2  ;;  %v3804_v7 = vsel %vm682_vm7, %v1093_v10, %v1092_v50  ;;  %v4363_v50 = vld [vmem:[#allocation61_spill] sm:$0xff] }
 0x289   : > { %v4360_v41 = vrot.slane %v4359_v39, 2  ;;  %v3812_v62 = vsel %vm682_vm7, %v1230_v0, %v1229_v19  ;;  %v1362_v33 = vrot.slane %v1331_v53, 1  ;;  %v1249_v10 = vadd.f32 %v1245_v34, %v1112_v2 }
 0x28a   : > { %v3794_v25 = vmul.f32 %v4355_v56, %v1301_v21  ;;  %v3798_v14 = vmul.f32 %v4356_v28, %v1303_v49  ;;  %v1375_v37 = vsel %vm670_vm9, %v4357_v48, %v1373_v29  ;;  %v4358_v42 = vmov %v4355_v56  ;;  %v4361_v49 = vld [vmem:[#allocation60_spill] sm:$0xff] }
 0x28b   : > { %v1336_v13 = vmul.f32 %v4358_v42, %v1302_v47  ;;  %v1361_v20 = vsel %vm670_vm9, %v4360_v41, %v1359_v44  ;;  %v1376_v21 = vrot.slane %v1332_v40, 1  ;;  %v1333_v5 = vmul.f32 %v4340_v36, %v4361_v49  ;;  %v4373_v49 = vld [vmem:[#allocation63_spill] sm:$0xff] }
 0x28c   : > { %v4362_v17 = vmov %v4356_v28  ;;  %v1334_v30 = vmul.f32 %v4340_v36, %v4363_v50  ;;  %v4364_v18 = vrot.slane %v3385_v59, 6  ;;  %v1363_v24 = vsel %vm673_vm15, %v1362_v33, %v1361_v20  ;;  %v4371_v20 = vld [vmem:[#allocation62_spill] sm:$0xff] }
 0x28d   : > { %v1338_v23 = vmul.f32 %v4362_v17, %v1304_v35  ;;  %v1377_v47 = vsel %vm673_vm15, %v1376_v21, %v1375_v37  ;;  %v1365_v44 = vrot.slane %v3794_v25, 7  ;;  %v1367_v45 = vrot.slane %v3798_v14, 6 }
 0x28e   : > { %v1435_v40 = vsel %vm401_vm4, %v4364_v18, 0.0  ;;  %v4365_v27 = vrot.slane %v3385_v59, 7  ;;  %v1379_v29 = vrot.slane %v1336_v13, 7  ;;  %v4366_v36 = vrot.slane %v3381_v15, 6 }
 0x28f   : > { %v4367_v19 = vrot.slane %v2711_v8, 5  ;;  %v1378_v56 = vsel %vm676_vm2, %v1334_v30, %v1377_v47  ;;  %v1381_v28 = vrot.slane %v1338_v23, 6  ;;  %v1409_v48 = vrot.slane %v3385_v59, 1 }
 0x290   : > { %v1437_v53 = vsel %vm401_vm4, %v4365_v27, 0.0  ;;  %v1434_v2 = vsel %vm400_vm3, %v4366_v36, 0.0  ;;  %v4369_v37 = vrot.slane %v2711_v8, 6  ;;  %v3847_v13 = vsel %vm676_vm2, %v1333_v5, %v1363_v24 }
 0x291   : > { %v1466_v0 = vmul.f32 %v4367_v19, %v3492_v22  ;;  %v4368_v35 = vmov %v4367_v19  ;;  %v1408_v39 = vrot.slane %v3381_v15, 1  ;;  %v4370_v41 = vrot.slane %v2711_v8, 7 }
 0x292   : > { %v1467_v34 = vmul.f32 %v4368_v35, %v3496_v52  ;;  %v1469_v42 = vmul.f32 %v4369_v37, %v1435_v40  ;;  %v4372_v21 = vrot.slane %v4371_v20, 6  ;;  %v4374_v52 = vrot.slane %v4373_v49, 5  ;;  %v4379_v40 = vld [vmem:[#allocation64_spill] sm:$0xff] }
 0x293   : > { %v1471_v22 = vmul.f32 %v4370_v41, %v1437_v53  ;;  %v4375_v23 = vrot.slane %v3381_v15, 7  ;;  %v4376_v50 = vmov %v4369_v37  ;;  %v4377_v30 = vrot.slane %v3481_v46, 4 }
 0x294   : > { %v1494_v17 = vsel %vm664_vm6, %v4374_v52, %v4372_v21  ;;  %v1468_v5 = vmul.f32 %v4376_v50, %v1434_v2  ;;  %v4378_v18 = vrot.slane %v3473_v58, 6  ;;  %v4380_v24 = vrot.slane %v4379_v40, 5 }
 0x295   : > { %v1436_v33 = vsel %vm400_vm3, %v4375_v23, 0.0  ;;  %v1496_v47 = vsel %vm667_vm8, %v4377_v30, %v1494_v17  ;;  %v1380_v53 = vsel %vm679_vm5, %v1379_v29, %v1378_v56  ;;  %v1497_v36 = vrot.slane %v1466_v0, 3 }
 0x296   : > { %v1508_v27 = vsel %vm664_vm6, %v4380_v24, %v4378_v18  ;;  %v4381_v19 = vrot.slane %v3487_v3, 4  ;;  %v1511_v37 = vrot.slane %v1467_v34, 3  ;;  %v1438_v46 = vsel %vm400_vm3, %v3381_v15, 0.0 }
 0x297   : > { %v1439_v58 = vsel %vm401_vm4, %v3385_v59, 0.0  ;;  %v1441_v2 = vsel %vm401_vm4, %v1409_v48, 0.0  ;;  %v1513_v41 = vrot.slane %v1469_v42, 2  ;;  %v4382_v29 = vrot.slane %v2711_v8, 7 }
 0x298   : > { %v1510_v35 = vsel %vm667_vm8, %v4381_v19, %v1508_v27  ;;  %v1498_v3 = vsel %vm670_vm9, %v1497_v36, %v1496_v47  ;;  %v1515_v34 = vrot.slane %v1471_v22, 1  ;;  %v1382_v20 = vsel %vm682_vm7, %v1381_v28, %v1380_v53 }
 0x299   : > { %v1470_v0 = vmul.f32 %v4382_v29, %v1436_v33  ;;  %v1512_v56 = vsel %vm670_vm9, %v1511_v37, %v1510_v35  ;;  %v1440_v15 = vsel %vm400_vm3, %v1408_v39, 0.0  ;;  %v1499_v21 = vrot.slane %v1468_v5, 2 }
 0x29a   : > { %v1514_v59 = vsel %vm673_vm15, %v1513_v41, %v1512_v56  ;;  %v4383_v49 = vrot.slane %v2711_v8, 1  ;;  %v1544_v52 = vrot.slane %v3468_v12, 6  ;;  %v4384_v17 = vrot.slane %v3458_v31, 4 }
 0x29b   : > { %v1516_v42 = vsel %vm676_vm2, %v1515_v34, %v1514_v59  ;;  %v1473_v28 = vmul.f32 %v2711_v8, %v1439_v58  ;;  %v1500_v23 = vsel %vm673_vm15, %v1499_v21, %v1498_v3  ;;  %v1543_v39 = vrot.slane %v3458_v31, 6 }
 0x29c   : > { %v1475_v48 = vmul.f32 %v4383_v49, %v1441_v2  ;;  %v1569_v22 = vsel %vm400_vm3, %v4384_v17, 0.0  ;;  %v1546_v33 = vrot.slane %v3468_v12, 7  ;;  %v1386_v50 = vadd.f32 %v1382_v20, %v1249_v10 }
 0x29d   : > { %v1501_v5 = vrot.slane %v1470_v0, 1  ;;  %v1570_v30 = vsel %vm401_vm4, %v1540_v54, 0.0  ;;  %v1571_v47 = vsel %vm400_vm3, %v1541_v51, 0.0  ;;  %v1517_v18 = vsel %vm679_vm5, %v1473_v28, %v1516_v42  ;;  %v4394_v28 = vld [vmem:[#allocation19_spill] sm:$0xff] }
 0x29e   : > { %v1545_v40 = vrot.slane %v3458_v31, 7  ;;  %v1572_v10 = vsel %vm401_vm4, %v1542_v6, 0.0  ;;  %v4385_v24 = vrot.slane %v2713_v9, 4  ;;  %v1472_v53 = vmul.f32 %v2711_v8, %v1438_v46 }
 0x29f   : > { %v1502_v54 = vsel %vm676_vm2, %v1501_v5, %v1500_v23  ;;  %v1518_v36 = vrot.slane %v1475_v48, 7  ;;  %v1574_v51 = vsel %vm401_vm4, %v1544_v52, 0.0  ;;  %v1573_v19 = vsel %vm400_vm3, %v1543_v39, 0.0 }
 0x2a0   : > { %v1603_v27 = vmul.f32 %v4385_v24, %v1569_v22  ;;  %v1576_v35 = vsel %vm401_vm4, %v1546_v33, 0.0  ;;  %v4386_v37 = vmov %v4385_v24  ;;  %v4387_v58 = vrot.slane %v2713_v9, 5 }
 0x2a1   : > { %v1604_v6 = vmul.f32 %v4386_v37, %v1570_v30  ;;  %v1519_v46 = vsel %vm682_vm7, %v1518_v36, %v1517_v18  ;;  %v1631_v0 = vsel %vm664_vm6, %v1630_v11, %v1629_v1  ;;  %v1632_v3 = vrot.slane %v3574_v57, 5 }
 0x2a2   : > { %v1605_v2 = vmul.f32 %v4387_v58, %v1571_v47  ;;  %v4388_v41 = vmov %v4387_v58  ;;  %v1575_v56 = vsel %vm400_vm3, %v1545_v40, 0.0  ;;  %v4389_v34 = vrot.slane %v2713_v9, 6 }
 0x2a3   : > { %v1606_v29 = vmul.f32 %v4388_v41, %v1572_v10  ;;  %v1634_v21 = vrot.slane %v1603_v27, 4  ;;  %v4390_v59 = vrot.slane %v3549_v60, 7  ;;  %v4391_v49 = vrot.slane %v3567_v63, 6 }
 0x2a4   : > { %v1608_v20 = vmul.f32 %v4389_v34, %v1574_v51  ;;  %v4392_v26 = vmov %v4389_v34  ;;  %v4393_v1 = vrot.slane %v2713_v9, 7  ;;  %v1633_v57 = vsel %vm667_vm8, %v1632_v3, %v1631_v0  ;;  %v1682_v34 = vld [vmem:[#allocation5] sm:$0xf] }
 0x2a5   : > { %v1645_v48 = vsel %vm664_vm6, %v4391_v49, %v4390_v59  ;;  %v1607_v16 = vmul.f32 %v4392_v26, %v1573_v19  ;;  %v1646_v42 = vrot.slane %v3589_v38, 5  ;;  %v1635_v52 = vsel %vm670_vm9, %v1634_v21, %v1633_v57 }
 0x2a6   : > { %v1610_v11 = vmul.f32 %v4393_v1, %v1576_v35  ;;  %v1636_v17 = vrot.slane %v1605_v2, 3  ;;  %v1648_v22 = vrot.slane %v1604_v6, 4  ;;  %v700_v60 = vadd.f32 %v3666_v61, %v4394_v28 }
 0x2a7   : > { %v1578_v63 = vsel %vm401_vm4, %v3468_v12, 0.0  ;;  %v4395_v23 = vmov %v4393_v1  ;;  %v1647_v33 = vsel %vm667_vm8, %v1646_v42, %v1645_v48  ;;  %v1650_v5 = vrot.slane %v1606_v29, 3 }
 0x2a8   : > { %v1609_v39 = vmul.f32 %v4395_v23, %v1575_v56  ;;  %v1637_v30 = vsel %vm673_vm15, %v1636_v17, %v1635_v52  ;;  %v1649_v38 = vsel %vm670_vm9, %v1648_v22, %v1647_v33  ;;  %v1652_v47 = vrot.slane %v1608_v20, 2  ;;  %v1692_v52 = vld [vmem:[%s4078_s4] sm:$0x1] }
 0x2a9   : > { %v837_v18 = vadd.f32 %v3669_v4, %v700_v60  ;;  %v4396_v40 = vrot.slane %v2711_v8, 1  ;;  %v1638_v10 = vrot.slane %v1607_v16, 2  ;;  %v1651_v43 = vsel %vm673_vm15, %v1650_v5, %v1649_v38  ;;  %v1694_v60 = vld [vmem:[#allocation7] sm:$0xf] }
 0x2aa   : > { %v1654_v12 = vrot.slane %v1610_v11, 1  ;;  %v1366_v24 = vsel %vm679_vm5, %v1365_v44, %v3847_v13  ;;  %v1612_v27 = vmul.f32 %v2713_v9, %v1578_v63  ;;  %v1653_v36 = vsel %vm676_vm2, %v1652_v47, %v1651_v43  ;;  %v1663_v13 = vpop.permute.xlu0 %1662 }
 0x2ab   : > { %v1474_v61 = vmul.f32 %v4396_v40, %v1440_v15  ;;  %v974_v51 = vadd.f32 %v3744_v55, %v837_v18  ;;  %v1503_v4 = vsel %vm679_vm5, %v1472_v53, %v1502_v54  ;;  %v1523_v19 = vadd.f32 %v1519_v46, %v1386_v50  ;;  %v2273_v40 = vld [vmem:[%s2659_s24] sm:$0xff]  ;;  %s2364_s24 = scalar_lea.vmem %s2363_s21, 256 }
 0x2ac   : > { %v1639_v8 = vsel %vm676_vm2, %v1638_v10, %v1637_v30  ;;  %v1655_v15 = vsel %vm679_vm5, %v1654_v12, %v1653_v36  ;;  %v1577_v35 = vsel %vm400_vm3, %v3458_v31, 0.0  ;;  %v1640_v25 = vrot.slane %v1609_v39, 1  ;;  %p2366_p7 = scmp.lt.s32.totalorder %s2364_s24, %s2358_s15 }
 0x2ad   : > { %v1656_v44 = vsel %vm682_vm7, %v1612_v27, %v1655_v15  ;;  %v1111_v37 = vadd.f32 %v3804_v7, %v974_v51  ;;  %v1368_v55 = vsel %vm682_vm7, %v1367_v45, %v1366_v24  ;;  %v1504_v53 = vrot.slane %v1474_v61, 7 }
 0x2ae   : > { %v1660_v50 = vadd.f32 %v1656_v44, %v1523_v19  ;;  %v1641_v54 = vsel %vm679_vm5, %v1640_v25, %v1639_v8  ;;  %v1611_v32 = vmul.f32 %v2713_v9, %v1577_v35  ;;  %vm1684_vm3 = vcmask 27648   ;;  %v1702_v33 = vpop.permute.xlu0 %1701  ;;  %p2367_p8 = por %p2366_p7, %p2365_p4 }
 0x2af   : > { %v1248_v6 = vadd.f32 %v3812_v62, %v1111_v37  ;;  %v1505_v58 = vsel %vm682_vm7, %v1504_v53, %v1503_v4  ;;  %v4397_v11 = vlaneseq  ;;  %v4398_v39 = vmov 0.0  }
 0x2b0   : > { %v1666_v31 = vadd.f32 %v1663_v13, %v1660_v50  ;;  %v1642_v46 = vsel %vm682_vm7, %v1611_v32, %v1641_v54  ;;  %p2368_p11 = pnand %p2367_p8, %p2361_p3 }
 0x2b1   : > { %v1385_v2 = vadd.f32 %v1368_v55, %v1248_v6  ;;  %v1696_v57 = vshrl.u32 %v4397_v11, 7 }
 0x2b2   : > { %v1670_v41 = vrot.slane %v1666_v31, 4  ;;  %v1845_v11 = vpop.permute.xlu0 %1844 }
 0x2b3   : > { %v1522_v7 = vadd.f32 %v1505_v58, %v1385_v2  ;;  %v1697_v22 = vsub.s32 0, %v1696_v57 }
 0x2b4   : > { %v1674_v29 = vmul.f32 %v1670_v41, %v1666_v31 }
 0x2b5   : > { %v1659_v14 = vadd.f32 %v1642_v46, %v1522_v7 }
 0x2b6   : > { %2147 = vmatprep.subr.msk.mxu1 %vm405_vm0, %v1674_v29  ;;  %v1676_v56 = vsel %vm405_vm0, %v1674_v29, 0.0 }
 0x2b7   : > { %v1665_v45 = vadd.f32 %v1663_v13, %v1659_v14 }
 0x2b9   : > { %v1669_v0 = vrot.slane %v1665_v45, 4 }
 0x2bb   : > { %v1673_v3 = vmul.f32 %v1669_v0, %v1665_v45 }
 0x2bd   : > { %2148 = vmatpush1.msk.msra.mxu1 %vm405_vm0, %v1673_v3  ;;  %v1675_v62 = vsel %vm405_vm0, %v1673_v3, 0.0 }
 0x2be   : > { %v1677_v9 = vadd.f32 %v1676_v56, %v1675_v62 }
 0x2c0   : > { %1678 = vadd.xlane.f32.xlu1 %v1677_v9 }
 0x34d   : > { %v1679_v20 = vpop.xlane.xlu1 %1678 }
 0x34e   : > { %v1681_v21 = vmul.f32 0.00390625, %v1679_v20 }
 0x350   : > { %v1683_v59 = vmul.f32 %v1682_v34, %v1681_v21 }
 0x352   : > { %v1685_v49 = vsel %vm1684_vm3, %v1683_v59, 0.0 }
 0x353   : > { %v1686_v48 = vrot.slane %v1685_v49, 4 }
 0x355   : > { %v1687_v26 = vadd.f32 %v1686_v48, %v1685_v49 }
 0x357   : > { %v1688_v16 = vrot.slane %v1687_v26, 2 }
 0x359   : > { %v1689_v1 = vadd.f32 %v1688_v16, %v1687_v26 }
 0x35b   : > { %v1690_v42 = vrot.slane %v1689_v1, 1 }
 0x35d   : > { %v1691_v17 = vadd.f32 %v1690_v42, %v1689_v1  ;;  %v1842_v1 = vld [vmem:[%s4080_s6] sm:$0xff] }
 0x35f   : > { %v1693_v28 = vadd.f32 %v1692_v52, %v1691_v17 }
 0x361   : > { %v1698_v63 = vrot.slane %v1693_v28, %v1697_v22 }
 0x363   : > { %v1699_v23 = vmul.f32 %v1698_v63, %v1694_v60 }
 0x365   : > { %2149 = vmatmul.mubr.msk.f32.vlgmr.msra.gmra.mrb[0].mxu1 %vm465_vm1, %v1699_v23  ;;  %v1935_v23 = vld [vmem:[%s4081_s7] sm:$0xf] }
 0x366   : > { %2013 = vmatprep.mubr.f32.mxu1 %v4398_v39  ;;  %v1938_v39 = vpop.permute.xlu0 %1937 }
 0x438   : > { %v1779_v5 = vpop.f32.mrb[0].mxu1 }
 0x439   : > { %v1780_v30 = vadd.f32 %v1779_v5, %v1702_v33  ;;  %v1781_v38 = vpop.f32.mrb[1].mxu1 }
 0x43a   : > { %v1782_v47 = vadd.f32 %v1781_v38, %v1702_v33 }
 0x43c   : > { %v1786_v18 = vcombine.low %v1780_v30, %v1782_v47 }
 0x43e   : > { %v4004_v61 = vadd.f32 %v2273_v40, %v1786_v18 }
 0x440   : > { %v1790_v10 = vcombine.high %v4004_v61, %v4004_v61  ;;  %v1792_v43 = vsel %vm405_vm0, %v4004_v61, 0.0 }
 0x441   : > { %v1793_v12 = vrot.slane %v1792_v43, 4 }
 0x442   : > { %v1799_v24 = vsel %vm405_vm0, %v1790_v10, 0.0 }
 0x443   : > { %v1794_v27 = vadd.f32 %v1793_v12, %v1792_v43  ;;  %v1800_v36 = vrot.slane %v1799_v24, 4 }
 0x445   : > { %v1795_v51 = vrot.slane %v1794_v27, 2  ;;  %v1801_v4 = vadd.f32 %v1800_v36, %v1799_v24 }
 0x447   : > { %v1796_v19 = vadd.f32 %v1795_v51, %v1794_v27  ;;  %v1802_v8 = vrot.slane %v1801_v4, 2 }
 0x449   : > { %v1797_v15 = vrot.slane %v1796_v19, 1  ;;  %v1803_v35 = vadd.f32 %v1802_v8, %v1801_v4 }
 0x44b   : > { %v1798_v25 = vadd.f32 %v1797_v15, %v1796_v19  ;;  %v1804_v44 = vrot.slane %v1803_v35, 1 }
 0x44d   : > { %v1805_v13 = vadd.f32 %v1804_v44, %v1803_v35  ;;  %v1806_v37 = vmul.f32 0.25, %v1798_v25 }
 0x44f   : > { %v1807_v55 = vmul.f32 0.25, %v1805_v13 }
 0x451   : > { %v1810_v53 = vcombine.low %v1806_v37, %v1807_v55 }
 0x453   : > { %v1812_v50 = vsub.f32 %v4004_v61, %v1810_v53 }
 0x455   : > { %v1813_v54 = vmul.f32 %v1812_v50, %v1812_v50 }
 0x457   : > { %v1815_v6 = vcombine.high %v1813_v54, %v1813_v54  ;;  %v1817_v58 = vsel %vm405_vm0, %v1813_v54, 0.0 }
 0x458   : > { %v1818_v32 = vrot.slane %v1817_v58, 4 }
 0x459   : > { %v1824_v31 = vsel %vm405_vm0, %v1815_v6, 0.0 }
 0x45a   : > { %v1819_v2 = vadd.f32 %v1818_v32, %v1817_v58  ;;  %v1825_v46 = vrot.slane %v1824_v31, 4 }
 0x45c   : > { %v1820_v41 = vrot.slane %v1819_v2, 2  ;;  %v1826_v7 = vadd.f32 %v1825_v46, %v1824_v31 }
 0x45e   : > { %v1821_v29 = vadd.f32 %v1820_v41, %v1819_v2  ;;  %v1827_v14 = vrot.slane %v1826_v7, 2 }
 0x460   : > { %v1822_v45 = vrot.slane %v1821_v29, 1  ;;  %v1828_v0 = vadd.f32 %v1827_v14, %v1826_v7 }
 0x462   : > { %v1823_v3 = vadd.f32 %v1822_v45, %v1821_v29  ;;  %v1829_v56 = vrot.slane %v1828_v0, 1 }
 0x464   : > { %v1830_v62 = vadd.f32 %v1829_v56, %v1828_v0  ;;  %v1831_v9 = vmul.f32 0.25, %v1823_v3 }
 0x466   : > { %v1832_v34 = vmul.f32 0.25, %v1830_v62  ;;  %v1833_v20 = vadd.f32 1e-06, %v1831_v9 }
 0x468   : > { %v1834_v21 = vadd.f32 1e-06, %v1832_v34  ;;  %2269 = vrsqrt.f32 %v1833_v20 }
 0x46a   : > { %2271 = vrsqrt.f32 %v1834_v21 }
 0x472   : > { %v2270_v59 = vpop.eup %2269 }
 0x474   : > { %v2272_v49 = vpop.eup %2271 }
 0x475   : > { %v1839_v48 = vcombine.low %v2270_v59, %v2272_v49 }
 0x477   : > { %v1841_v26 = vmul.f32 %v1839_v48, %v1812_v50 }
 0x479   : > { %v1848_v16 = vcombine.high %v1841_v26, %v1841_v26 }
 0x47b   : > { %2150 = vmatprep.subr.msk.mxu0 %vm405_vm0, %v1848_v16 }
 0x47c   : > { %2151 = vmatpush1.msk.msra.mxu0 %vm405_vm0, %v1841_v26 }
 0x47d   : > { %2152 = vmatmul.mubr.msk.f32.vlgmr.msra.gmra.mrb[2].mxu0 %vm465_vm1, %v1842_v1 }
 0x550   : > { %v1922_v57 = vpop.f32.mrb[2].mxu0 }
 0x551   : > { %v1923_v42 = vadd.f32 %v1922_v57, %v1845_v11  ;;  %v1924_v52 = vpop.f32.mrb[3].mxu0 }
 0x552   : > { %v1925_v17 = vadd.f32 %v1924_v52, %v1845_v11 }
 0x553   : > { %v1929_v22 = vrot.slane %v1923_v42, 4 }
 0x554   : > { %v1930_v28 = vrot.slane %v1925_v17, 4 }
 0x555   : > { %v1933_v63 = vmul.f32 %v1929_v22, %v1923_v42 }
 0x556   : > { %v1934_v60 = vmul.f32 %v1930_v28, %v1925_v17 }
 0x558   : > { %2153 = vmatprep.subr.msk.mxu1 %vm405_vm0, %v1934_v60 }
 0x559   : > { %2154 = vmatpush1.msk.msra.mxu1 %vm405_vm0, %v1933_v63 }
 0x55a   : > { %2155 = vmatmul.mubr.msk.f32.vlgmr.msra.gmra.mrb[2].mxu1 %vm465_vm1, %v1935_v23 }
 0x62d   : > { %v2015_v33 = vpop.f32.mrb[2].mxu1 }
 0x62e   : > { %v2016_v5 = vadd.f32 %v2015_v33, %v1938_v39  ;;  %v2017_v30 = vpop.f32.mrb[3].mxu1 }
 0x62f   : > { %v2018_v38 = vadd.f32 %v2017_v30, %v1938_v39 }
 0x631   : > { %v2022_v47 = vcombine.low %v2016_v5, %v2018_v38 }
 0x633   : > { %v2024_v18 = vadd.f32 %v2022_v47, %v4004_v61 }
 0x635   : > { %2025 = vst [vmem:[%s390_s25] sm:$0xff] %v2024_v18 }
 0x636   : > { %2371 = shalt.err (!%p2368_p11)
}
 0x637   : > { %s2372_s26 = scalar_lea.hbm %s4032_s22, 128  ;;  %s2376_s29 = scalar_lea.hbm %s4084_s10, 256 }
 0x638   : > { %p2373_p13 = scmp.ne.s32.totalorder %s4032_s22, %s2372_s26  ;;  %p2377_p6 = scmp.lt.u32.totalorder %s4032_s22, %s4084_s10 }
 0x639   : > { %p2378_p5 = scmp.lt.u32.totalorder %s2376_s29, %s2372_s26  ;;  %p2380_p12 = scmp.lt.u32.totalorder %s2372_s26, %s4032_s22 }
 0x63a   : > { %p2374_p1 = pnand %p2373_p13, %p4399_p10 }
 0x63b   : > { %p2379_p9 = por %p2378_p5, %p2377_p6 }
 0x63c   : > { %p2375_p0 = pneg %p2374_p1 }
 0x63d   : > { %p2381_p2 = por %p2380_p12, %p2379_p9 }
 0x63f   : > { %p2382_p3 = pnand %p2381_p2, %p2375_p0 }
 0x641   : > { %2385 = shalt.err (!%p2382_p3)
}
 0x642   : > { %2175 = dma.vmem_to_hbm [thread:$0]  (%p4399_p10), %s4034_s30, 128, %s4032_s22, %s2027_s20  }
 0x643 PF: > { %s4400_s25 = sld [smem:[#allocation15_spill]]  ;;  %p2197_p4 = scmp.ge.s32.totalorder %s2428_s16, 2 }
 0x644   : > { %s2053_s12 = sand.u32 1, %s2416_s13  }
 0x645   : > { %s2054_s28 = scalar_lea.sflag [#allocation4], %s2053_s12 }
 0x649   : > { %p4401_p7 = scmp.ne.s32.totalorder %s4400_s25, 0 }
 0x64b   : > { %p2188_p8 = pnand %p2197_p4, %p4401_p7 }
 0x64d   : > { %2411 = dma.done.wait (!%p2188_p8), %s2054_s28, 128  }
 0x64e   : > { %2413 = vsyncadd (!%p2188_p8), %s2054_s28, 4294967168  ;;  %s4402_s16 = sld [smem:[#allocation13_spill]]  ;;  %s4403_s15 = sld [smem:[#allocation12_spill]] }
 0x64f   : > { %s4404_s17 = sld [smem:[#allocation14_spill]]  ;;  %s4405_s13 = smov %s2420_s14 }
 0x654   : > { %p22_p11 = scmp.ge.s32.totalorder %s4402_s16, 4   ;;  %s4406_s14 = smov %s4403_s15 }
 0x655   : > { %s4407_s15 = smov %s4404_s17 }
 0x656   :  { %24 = sbr.rel (!%p22_p11) target bundleno = 5 (0x5), region = 108 }
 0x65d   :  { %2059 = vsyncpa [#allocation3], 1 }
 0x65e   :  { %2061 = vsyncpa [#allocation3 + $0x1], 1 }
 0x65f   :  { %2062 = vsyncpa [#allocation6], 1 }
 0x660   :  { %2063 = vsyncpa [#allocation4], 1 }
 0x661   :  { %2065 = vsyncpa [#allocation4 + $0x1], 1 }

</bundles_post_ra>
